<compile_context>
chip_gen: v6e
topology: v6e:2x2x1
jax: 0.10.0
libtpu: 0.0.40
codegen_flags: <defaults>
</compile_context>

<pallas_src>
import jax
import jax.numpy as jnp
from jax import lax
from jax.experimental import pallas as pl
from jax.experimental.pallas import tpu as pltpu


def _ocr_kernel(feats_ref, proxy_ref,
                wp1_ref, bp1_ref, wp2_ref, bp2_ref,
                wo1_ref, bo1_ref, wo2_ref, bo2_ref,
                wd_ref, bd_ref,
                wu_ref, bu_ref,
                wfu_ref, wfx_ref, bf_ref,
                out_ref):
    """One grid step == one (batch, pixel-tile) pair."""
    f32 = jnp.float32
    bf16 = jnp.bfloat16

    x = feats_ref[0]            # (TQ, C)  bf16 pixel features (this tile)
    p = proxy_ref[0]            # (M,  C)  bf16 object-region features

    def lin_relu(a, w_ref, b_ref):
        # bf16 matmul on the MXU, f32 accumulate, f32 bias + ReLU (VPU in f32).
        y = jnp.dot(a.astype(bf16), w_ref[...],
                    preferred_element_type=f32) + b_ref[...]
        return jnp.maximum(y, 0.0)

    # f_pixel: conv1x1+BN+ReLU x2 -> query (TQ, Kc).
    # key_channels**-0.5 is already folded into wp2/bp2 by the wrapper.
    q = lin_relu(lin_relu(x, wp1_ref, bp1_ref), wp2_ref, bp2_ref)
    # f_object / f_down: recomputed per tile (M is tiny -> negligible FLOPs,
    # avoids a carried VMEM scratch and keeps both grid axes parallel).
    k = lin_relu(lin_relu(p, wo1_ref, bo1_ref), wo2_ref, bo2_ref)   # (M, Kc)
    v = lin_relu(p, wd_ref, bd_ref)                                  # (M, Kc)

    # sim = softmax_over_M( (scaled q) @ k^T ), softmax math kept in f32.
    sim = lax.dot_general(q.astype(bf16), k.astype(bf16),
                          (((1,), (1,)), ((), ())),
                          preferred_element_type=f32)                # (TQ, M)
    sim = sim - jnp.max(sim, axis=-1, keepdims=True)
    e = jnp.exp(sim)
    denom = jnp.sum(e, axis=-1, keepdims=True)
    sm = e * pl.reciprocal(denom, approx=True)                       # EUP divide

    # context = sim @ value -> (TQ, Kc)
    ctx = jnp.dot(sm.astype(bf16), v.astype(bf16), preferred_element_type=f32)

    # f_up: conv1x1 + BN + ReLU -> (TQ, C)
    up = lin_relu(ctx, wu_ref, bu_ref)

    # conv_bn_dropout on cat([context, feats]) without the concat:
    #   cat([up, x]) @ wf == up @ wf_up + x @ wf_x     (Dropout(p=0) == identity)
    out = (jnp.dot(up.astype(bf16), wfu_ref[...], preferred_element_type=f32)
           + jnp.dot(x, wfx_ref[...], preferred_element_type=f32)
           + bf_ref[...])
    out = jnp.maximum(out, 0.0)                                      # (TQ, Cout_pad)

    out_ref[0] = out.astype(out_ref.dtype)


def _full_spec(shape):
    # whole-array block, same block for every grid step
    return pl.BlockSpec(shape, lambda b, t: (0,) * len(shape))


def _pick_tile(hw):
    # Largest pixel tile (<= 512) that divides HW and keeps the sublane dim a
    # multiple of 8.  512 is sized for v6e-class VMEM; on v7x (64 MiB VMEM)
    # this stays comfortably under the scoped limit for typical C as well.
    for c in (512, 256, 128, 64, 32, 16, 8):
        if hw >= c and hw % c == 0:
            return c
    return hw   # tiny / odd HW: whole-axis block (full array dim is always legal)


def spatial_ocr_forward(feats_nchw, proxy_nchw, params, key_channels, out_channels):
    N, C, H, W = feats_nchw.shape
    _, _, Hp, Wp = proxy_nchw.shape
    HW, M = H * W, Hp * Wp

    # NCHW -> channels-last token layout; bf16 halves the HBM traffic of the
    # (bandwidth-bound) kernel and feeds the MXU at native bf16 rate.
    # TODO(synk): if the surrounding model can run NHWC end-to-end these
    # transposes (an extra HBM round-trip at large HW) should be dropped.
    feats = jnp.transpose(feats_nchw.reshape(N, C, HW), (0, 2, 1)).astype(jnp.bfloat16)
    proxy = jnp.transpose(proxy_nchw.reshape(N, C, M), (0, 2, 1)).astype(jnp.bfloat16)

    (wp1, bp1), (wp2, bp2), (wo1, bo1), (wo2, bo2), (wd, bd), (wu, bu), (wf, bf) = params

    # Fold the key_channels**-0.5 softmax scale into the second f_pixel conv
    # (ReLU commutes with a positive scale), removing a (TQ, M) VPU multiply.
    s = jnp.float32(key_channels) ** -0.5
    wp2 = wp2 * s
    bp2 = bp2 * s

    # Split the final conv weight so the kernel never materializes the concat.
    wf_up, wf_x = wf[:C], wf[C:]

    # Lane-dense output: pad Cout to a multiple of 128 so the writeback uses
    # unmasked vst; the padding is sliced off below.
    cout_pad = ((out_channels + 127) // 128) * 128
    pad = cout_pad - out_channels
    if pad:
        wf_up = jnp.pad(wf_up, ((0, 0), (0, pad)))
        wf_x = jnp.pad(wf_x, ((0, 0), (0, pad)))
        bf = jnp.pad(bf, ((0, 0), (0, pad)))

    to_bf16 = lambda a: a.astype(jnp.bfloat16)
    weight_args = (to_bf16(wp1), bp1, to_bf16(wp2), bp2,
                   to_bf16(wo1), bo1, to_bf16(wo2), bo2,
                   to_bf16(wd), bd, to_bf16(wu), bu,
                   to_bf16(wf_up), to_bf16(wf_x), bf)
    weight_specs = [_full_spec(w.shape) for w in weight_args]

    tq = _pick_tile(HW)
    grid = (N, HW // tq)

    out = pl.pallas_call(
        _ocr_kernel,
        out_shape=jax.ShapeDtypeStruct((N, HW, cout_pad), jnp.float32),
        grid_spec=pltpu.PrefetchScalarGridSpec(
            num_scalar_prefetch=0,
            grid=grid,
            in_specs=[
                pl.BlockSpec((1, tq, C), lambda b, t: (b, t, 0)),
                pl.BlockSpec((1, M, C), lambda b, t: (b, 0, 0)),
                *weight_specs,
            ],
            out_specs=pl.BlockSpec((1, tq, cout_pad), lambda b, t: (b, t, 0)),
        ),
        compiler_params=pltpu.CompilerParams(
            # both axes independent (k/v recomputed per tile) -> megacore sharding
            dimension_semantics=("parallel", "parallel"),
            # explicit scoped VMEM: above v5e's 16 MiB default, safe on every gen
            vmem_limit_bytes=32 * 1024 * 1024,
        ),
    )(feats, proxy, *weight_args)

    out = out[..., :out_channels]                       # drop lane padding
    # (N, HW, Cout) -> NCHW
    return jnp.transpose(out, (0, 2, 1)).reshape(N, out_channels, H, W)


# ---------------- deterministic parameter construction (no checkpoint) -------

def _bn_affine(channels):
    """Deterministic inference-mode BatchNorm params folded to (scale, bias)."""
    i = jnp.arange(channels, dtype=jnp.float32)
    gamma = 1.0 + 0.01 * i
    beta = 0.005 * i
    running_mean = 0.002 * i
    running_var = 1.0 + 0.01 * i
    eps = 1e-5
    scale = gamma / jnp.sqrt(running_var + eps)
    bias = beta - running_mean * scale
    return scale, bias


def _conv1x1_weight(key, cin, cout):
    # (cin, cout) so that y = x @ W matches Conv2d(cin, cout, 1, bias=False)
    return jax.random.normal(key, (cin, cout), jnp.float32) * (1.0 / jnp.sqrt(cin))


def _conv_bn(key, cin, cout):
    w = _conv1x1_weight(key, cin, cout)
    scale, bias = _bn_affine(cout)
    return w * scale[None, :], bias.reshape(1, cout)


def make_params(key, in_channels, key_channels, out_channels):
    ks = jax.random.split(key, 7)
    # f_pixel (2x conv+BN), f_object (2x conv+BN), f_down, f_up, conv_bn_dropout
    return [
        _conv_bn(ks[0], in_channels, key_channels),      # f_pixel[0]
        _conv_bn(ks[1], key_channels, key_channels),     # f_pixel[1]
        _conv_bn(ks[2], in_channels, key_channels),      # f_object[0]
        _conv_bn(ks[3], key_channels, key_channels),     # f_object[1]
        _conv_bn(ks[4], in_channels, key_channels),      # f_down
        _conv_bn(ks[5], key_channels, in_channels),      # f_up
        _conv_bn(ks[6], 2 * in_channels, out_channels),  # conv_bn_dropout (p=0.0)
    ]


if __name__ == "__main__":
    # TODO(synk): scale>1 path (MaxPool2d + bilinear interpolate) not implemented; scale=1 assumed.
    N, C, H, W = 2, 32, 16, 16
    KEY_CH, OUT_CH = 16, 32
    M_REGIONS = 8   # proxy feats: N x C x M x 1 (object region representations)

    root = jax.random.PRNGKey(0)
    k_feats, k_proxy, k_params = jax.random.split(root, 3)

    feats = jax.random.normal(k_feats, (N, C, H, W), jnp.float32)
    proxy = jax.random.normal(k_proxy, (N, C, M_REGIONS, 1), jnp.float32)
    params = make_params(k_params, C, KEY_CH, OUT_CH)

    out = spatial_ocr_forward(feats, proxy, params, KEY_CH, OUT_CH)
    out = jax.block_until_ready(out)
    assert out.shape == (N, OUT_CH, H, W)
    print("KERNEL_OK")
</pallas_src>

<mosaic_0001>
module attributes {stable_mosaic.version = 11 : i64} {
  func.func @_ocr_kernel(%arg0: i32, %arg1: i32, %arg2: memref<1x256x32xbf16, #tpu.memory_space<vmem>>, %arg3: memref<1x8x32xbf16, #tpu.memory_space<vmem>>, %arg4: memref<32x16xbf16, #tpu.memory_space<vmem>>, %arg5: memref<1x16xf32, #tpu.memory_space<vmem>>, %arg6: memref<16x16xbf16, #tpu.memory_space<vmem>>, %arg7: memref<1x16xf32, #tpu.memory_space<vmem>>, %arg8: memref<32x16xbf16, #tpu.memory_space<vmem>>, %arg9: memref<1x16xf32, #tpu.memory_space<vmem>>, %arg10: memref<16x16xbf16, #tpu.memory_space<vmem>>, %arg11: memref<1x16xf32, #tpu.memory_space<vmem>>, %arg12: memref<32x16xbf16, #tpu.memory_space<vmem>>, %arg13: memref<1x16xf32, #tpu.memory_space<vmem>>, %arg14: memref<16x32xbf16, #tpu.memory_space<vmem>>, %arg15: memref<1x32xf32, #tpu.memory_space<vmem>>, %arg16: memref<32x128xbf16, #tpu.memory_space<vmem>>, %arg17: memref<32x128xbf16, #tpu.memory_space<vmem>>, %arg18: memref<1x128xf32, #tpu.memory_space<vmem>>, %arg19: memref<1x256x128xf32, #tpu.memory_space<vmem>>) attributes {dimension_semantics = [#tpu.dimension_semantics<parallel>, #tpu.dimension_semantics<parallel>], iteration_bounds = array<i64: 2, 1>, scalar_prefetch = 0 : i64, scratch_operands = 0 : i64, tpu.core_type = #tpu.core_type<tc>, window_params = [{transform_indices = @transform_0, window_bounds = array<i64: 1, 256, 32>}, {transform_indices = @transform_1, window_bounds = array<i64: 1, 8, 32>}, {pipeline_mode = #tpu.pipeline_mode<synchronous>, transform_indices = @transform_2, window_bounds = array<i64: 32, 16>}, {pipeline_mode = #tpu.pipeline_mode<synchronous>, transform_indices = @transform_3, window_bounds = array<i64: 1, 16>}, {pipeline_mode = #tpu.pipeline_mode<synchronous>, transform_indices = @transform_4, window_bounds = array<i64: 16, 16>}, {pipeline_mode = #tpu.pipeline_mode<synchronous>, transform_indices = @transform_5, window_bounds = array<i64: 1, 16>}, {pipeline_mode = #tpu.pipeline_mode<synchronous>, transform_indices = @transform_6, window_bounds = array<i64: 32, 16>}, {pipeline_mode = #tpu.pipeline_mode<synchronous>, transform_indices = @transform_7, window_bounds = array<i64: 1, 16>}, {pipeline_mode = #tpu.pipeline_mode<synchronous>, transform_indices = @transform_8, window_bounds = array<i64: 16, 16>}, {pipeline_mode = #tpu.pipeline_mode<synchronous>, transform_indices = @transform_9, window_bounds = array<i64: 1, 16>}, {pipeline_mode = #tpu.pipeline_mode<synchronous>, transform_indices = @transform_10, window_bounds = array<i64: 32, 16>}, {pipeline_mode = #tpu.pipeline_mode<synchronous>, transform_indices = @transform_11, window_bounds = array<i64: 1, 16>}, {pipeline_mode = #tpu.pipeline_mode<synchronous>, transform_indices = @transform_12, window_bounds = array<i64: 16, 32>}, {pipeline_mode = #tpu.pipeline_mode<synchronous>, transform_indices = @transform_13, window_bounds = array<i64: 1, 32>}, {pipeline_mode = #tpu.pipeline_mode<synchronous>, transform_indices = @transform_14, window_bounds = array<i64: 32, 128>}, {pipeline_mode = #tpu.pipeline_mode<synchronous>, transform_indices = @transform_15, window_bounds = array<i64: 32, 128>}, {pipeline_mode = #tpu.pipeline_mode<synchronous>, transform_indices = @transform_16, window_bounds = array<i64: 1, 128>}, {transform_indices = @transform_17, window_bounds = array<i64: 1, 256, 128>}]} {
    %c0 = arith.constant 0 : index
    %c0_0 = arith.constant 0 : index
    %c0_1 = arith.constant 0 : index
    %0 = vector.load %arg2[%c0, %c0_0, %c0_1] : memref<1x256x32xbf16, #tpu.memory_space<vmem>>, vector<1x256x32xbf16>
    %1 = vector.shape_cast %0 : vector<1x256x32xbf16> to vector<256x32xbf16>
    %c0_2 = arith.constant 0 : index
    %c0_3 = arith.constant 0 : index
    %c0_4 = arith.constant 0 : index
    %2 = vector.load %arg3[%c0_2, %c0_3, %c0_4] : memref<1x8x32xbf16, #tpu.memory_space<vmem>>, vector<1x8x32xbf16>
    %3 = vector.shape_cast %2 : vector<1x8x32xbf16> to vector<8x32xbf16>
    %c0_5 = arith.constant 0 : index
    %c0_6 = arith.constant 0 : index
    %4 = vector.load %arg4[%c0_5, %c0_6] : memref<32x16xbf16, #tpu.memory_space<vmem>>, vector<32x16xbf16>
    %cst = arith.constant dense<0.000000e+00> : vector<256x16xf32>
    %5 = tpu.matmul %1, %4, %cst {dimension_numbers = #tpu.dot_dimension_numbers<[1], [0], [0], [1], [0, 0, 1, 1], [], []>} : vector<256x32xbf16>, vector<32x16xbf16>, vector<256x16xf32> -> vector<256x16xf32>
    %c0_7 = arith.constant 0 : index
    %c0_8 = arith.constant 0 : index
    %6 = vector.load %arg5[%c0_7, %c0_8] : memref<1x16xf32, #tpu.memory_space<vmem>>, vector<1x16xf32>
    %7 = vector.broadcast %6 : vector<1x16xf32> to vector<256x16xf32>
    %8 = arith.addf %5, %7 : vector<256x16xf32>
    %cst_9 = arith.constant 0.000000e+00 : f32
    %9 = vector.broadcast %cst_9 : f32 to vector<256x16xf32>
    %10 = arith.maximumf %8, %9 : vector<256x16xf32>
    %11 = arith.truncf %10 : vector<256x16xf32> to vector<256x16xbf16>
    %c0_10 = arith.constant 0 : index
    %c0_11 = arith.constant 0 : index
    %12 = vector.load %arg6[%c0_10, %c0_11] : memref<16x16xbf16, #tpu.memory_space<vmem>>, vector<16x16xbf16>
    %cst_12 = arith.constant dense<0.000000e+00> : vector<256x16xf32>
    %13 = tpu.matmul %11, %12, %cst_12 {dimension_numbers = #tpu.dot_dimension_numbers<[1], [0], [0], [1], [0, 0, 1, 1], [], []>} : vector<256x16xbf16>, vector<16x16xbf16>, vector<256x16xf32> -> vector<256x16xf32>
    %c0_13 = arith.constant 0 : index
    %c0_14 = arith.constant 0 : index
    %14 = vector.load %arg7[%c0_13, %c0_14] : memref<1x16xf32, #tpu.memory_space<vmem>>, vector<1x16xf32>
    %15 = vector.broadcast %14 : vector<1x16xf32> to vector<256x16xf32>
    %16 = arith.addf %13, %15 : vector<256x16xf32>
    %cst_15 = arith.constant 0.000000e+00 : f32
    %17 = vector.broadcast %cst_15 : f32 to vector<256x16xf32>
    %18 = arith.maximumf %16, %17 : vector<256x16xf32>
    %c0_16 = arith.constant 0 : index
    %c0_17 = arith.constant 0 : index
    %19 = vector.load %arg8[%c0_16, %c0_17] : memref<32x16xbf16, #tpu.memory_space<vmem>>, vector<32x16xbf16>
    %cst_18 = arith.constant dense<0.000000e+00> : vector<8x16xf32>
    %20 = tpu.matmul %3, %19, %cst_18 {dimension_numbers = #tpu.dot_dimension_numbers<[1], [0], [0], [1], [0, 0, 1, 1], [], []>} : vector<8x32xbf16>, vector<32x16xbf16>, vector<8x16xf32> -> vector<8x16xf32>
    %c0_19 = arith.constant 0 : index
    %c0_20 = arith.constant 0 : index
    %21 = vector.load %arg9[%c0_19, %c0_20] : memref<1x16xf32, #tpu.memory_space<vmem>>, vector<1x16xf32>
    %22 = vector.broadcast %21 : vector<1x16xf32> to vector<8x16xf32>
    %23 = arith.addf %20, %22 : vector<8x16xf32>
    %cst_21 = arith.constant 0.000000e+00 : f32
    %24 = vector.broadcast %cst_21 : f32 to vector<8x16xf32>
    %25 = arith.maximumf %23, %24 : vector<8x16xf32>
    %26 = arith.truncf %25 : vector<8x16xf32> to vector<8x16xbf16>
    %c0_22 = arith.constant 0 : index
    %c0_23 = arith.constant 0 : index
    %27 = vector.load %arg10[%c0_22, %c0_23] : memref<16x16xbf16, #tpu.memory_space<vmem>>, vector<16x16xbf16>
    %cst_24 = arith.constant dense<0.000000e+00> : vector<8x16xf32>
    %28 = tpu.matmul %26, %27, %cst_24 {dimension_numbers = #tpu.dot_dimension_numbers<[1], [0], [0], [1], [0, 0, 1, 1], [], []>} : vector<8x16xbf16>, vector<16x16xbf16>, vector<8x16xf32> -> vector<8x16xf32>
    %c0_25 = arith.constant 0 : index
    %c0_26 = arith.constant 0 : index
    %29 = vector.load %arg11[%c0_25, %c0_26] : memref<1x16xf32, #tpu.memory_space<vmem>>, vector<1x16xf32>
    %30 = vector.broadcast %29 : vector<1x16xf32> to vector<8x16xf32>
    %31 = arith.addf %28, %30 : vector<8x16xf32>
    %cst_27 = arith.constant 0.000000e+00 : f32
    %32 = vector.broadcast %cst_27 : f32 to vector<8x16xf32>
    %33 = arith.maximumf %31, %32 : vector<8x16xf32>
    %c0_28 = arith.constant 0 : index
    %c0_29 = arith.constant 0 : index
    %34 = vector.load %arg12[%c0_28, %c0_29] : memref<32x16xbf16, #tpu.memory_space<vmem>>, vector<32x16xbf16>
    %cst_30 = arith.constant dense<0.000000e+00> : vector<8x16xf32>
    %35 = tpu.matmul %3, %34, %cst_30 {dimension_numbers = #tpu.dot_dimension_numbers<[1], [0], [0], [1], [0, 0, 1, 1], [], []>} : vector<8x32xbf16>, vector<32x16xbf16>, vector<8x16xf32> -> vector<8x16xf32>
    %c0_31 = arith.constant 0 : index
    %c0_32 = arith.constant 0 : index
    %36 = vector.load %arg13[%c0_31, %c0_32] : memref<1x16xf32, #tpu.memory_space<vmem>>, vector<1x16xf32>
    %37 = vector.broadcast %36 : vector<1x16xf32> to vector<8x16xf32>
    %38 = arith.addf %35, %37 : vector<8x16xf32>
    %cst_33 = arith.constant 0.000000e+00 : f32
    %39 = vector.broadcast %cst_33 : f32 to vector<8x16xf32>
    %40 = arith.maximumf %38, %39 : vector<8x16xf32>
    %41 = arith.truncf %18 : vector<256x16xf32> to vector<256x16xbf16>
    %42 = arith.truncf %33 : vector<8x16xf32> to vector<8x16xbf16>
    %cst_34 = arith.constant dense<0.000000e+00> : vector<256x8xf32>
    %43 = tpu.matmul %41, %42, %cst_34 {dimension_numbers = #tpu.dot_dimension_numbers<[1], [1], [0], [0], [0, 0, 1, 0], [], []>} : vector<256x16xbf16>, vector<8x16xbf16>, vector<256x8xf32> -> vector<256x8xf32>
    %cst_35 = arith.constant dense<0xFF800000> : vector<256xf32>
    %44 = vector.multi_reduction <maximumf>, %43, %cst_35 [1] : vector<256x8xf32> to vector<256xf32>
    %45 = vector.shape_cast %44 : vector<256xf32> to vector<256x1xf32>
    %46 = vector.broadcast %45 : vector<256x1xf32> to vector<256x8xf32>
    %47 = arith.subf %43, %46 : vector<256x8xf32>
    %48 = math.exp %47 : vector<256x8xf32>
    %cst_36 = arith.constant dense<0.000000e+00> : vector<256xf32>
    %49 = vector.multi_reduction <add>, %48, %cst_36 [1] : vector<256x8xf32> to vector<256xf32>
    %50 = vector.shape_cast %49 : vector<256xf32> to vector<256x1xf32>
    %51 = tpu.reciprocal %50 {approx = true} : vector<256x1xf32> -> vector<256x1xf32>
    %52 = vector.broadcast %51 : vector<256x1xf32> to vector<256x8xf32>
    %53 = arith.mulf %48, %52 : vector<256x8xf32>
    %54 = arith.truncf %53 : vector<256x8xf32> to vector<256x8xbf16>
    %55 = arith.truncf %40 : vector<8x16xf32> to vector<8x16xbf16>
    %cst_37 = arith.constant dense<0.000000e+00> : vector<256x16xf32>
    %56 = tpu.matmul %54, %55, %cst_37 {dimension_numbers = #tpu.dot_dimension_numbers<[1], [0], [0], [1], [0, 0, 1, 1], [], []>} : vector<256x8xbf16>, vector<8x16xbf16>, vector<256x16xf32> -> vector<256x16xf32>
    %57 = arith.truncf %56 : vector<256x16xf32> to vector<256x16xbf16>
    %c0_38 = arith.constant 0 : index
    %c0_39 = arith.constant 0 : index
    %58 = vector.load %arg14[%c0_38, %c0_39] : memref<16x32xbf16, #tpu.memory_space<vmem>>, vector<16x32xbf16>
    %cst_40 = arith.constant dense<0.000000e+00> : vector<256x32xf32>
    %59 = tpu.matmul %57, %58, %cst_40 {dimension_numbers = #tpu.dot_dimension_numbers<[1], [0], [0], [1], [0, 0, 1, 1], [], []>} : vector<256x16xbf16>, vector<16x32xbf16>, vector<256x32xf32> -> vector<256x32xf32>
    %c0_41 = arith.constant 0 : index
    %c0_42 = arith.constant 0 : index
    %60 = vector.load %arg15[%c0_41, %c0_42] : memref<1x32xf32, #tpu.memory_space<vmem>>, vector<1x32xf32>
    %61 = vector.broadcast %60 : vector<1x32xf32> to vector<256x32xf32>
    %62 = arith.addf %59, %61 : vector<256x32xf32>
    %cst_43 = arith.constant 0.000000e+00 : f32
    %63 = vector.broadcast %cst_43 : f32 to vector<256x32xf32>
    %64 = arith.maximumf %62, %63 : vector<256x32xf32>
    %65 = arith.truncf %64 : vector<256x32xf32> to vector<256x32xbf16>
    %c0_44 = arith.constant 0 : index
    %c0_45 = arith.constant 0 : index
    %66 = vector.load %arg16[%c0_44, %c0_45] : memref<32x128xbf16, #tpu.memory_space<vmem>>, vector<32x128xbf16>
    %cst_46 = arith.constant dense<0.000000e+00> : vector<256x128xf32>
    %67 = tpu.matmul %65, %66, %cst_46 {dimension_numbers = #tpu.dot_dimension_numbers<[1], [0], [0], [1], [0, 0, 1, 1], [], []>} : vector<256x32xbf16>, vector<32x128xbf16>, vector<256x128xf32> -> vector<256x128xf32>
    %c0_47 = arith.constant 0 : index
    %c0_48 = arith.constant 0 : index
    %68 = vector.load %arg17[%c0_47, %c0_48] : memref<32x128xbf16, #tpu.memory_space<vmem>>, vector<32x128xbf16>
    %cst_49 = arith.constant dense<0.000000e+00> : vector<256x128xf32>
    %69 = tpu.matmul %1, %68, %cst_49 {dimension_numbers = #tpu.dot_dimension_numbers<[1], [0], [0], [1], [0, 0, 1, 1], [], []>} : vector<256x32xbf16>, vector<32x128xbf16>, vector<256x128xf32> -> vector<256x128xf32>
    %70 = arith.addf %67, %69 : vector<256x128xf32>
    %c0_50 = arith.constant 0 : index
    %c0_51 = arith.constant 0 : index
    %71 = vector.load %arg18[%c0_50, %c0_51] : memref<1x128xf32, #tpu.memory_space<vmem>>, vector<1x128xf32>
    %72 = vector.broadcast %71 : vector<1x128xf32> to vector<256x128xf32>
    %73 = arith.addf %70, %72 : vector<256x128xf32>
    %cst_52 = arith.constant 0.000000e+00 : f32
    %74 = vector.broadcast %cst_52 : f32 to vector<256x128xf32>
    %75 = arith.maximumf %73, %74 : vector<256x128xf32>
    %c0_53 = arith.constant 0 : index
    %c0_54 = arith.constant 0 : index
    %c0_55 = arith.constant 0 : index
    %76 = vector.load %arg19[%c0_53, %c0_54, %c0_55] : memref<1x256x128xf32, #tpu.memory_space<vmem>>, vector<1x256x128xf32>
    %77 = vector.shape_cast %76 : vector<1x256x128xf32> to vector<256x128xf32>
    %78 = vector.shape_cast %75 : vector<256x128xf32> to vector<1x256x128xf32>
    tpu.vector_store %arg19[%c0_53, %c0_54, %c0_55], %78 {strides = array<i32>} : memref<1x256x128xf32, #tpu.memory_space<vmem>>, vector<1x256x128xf32>,
    return
  }
  func.func @transform_0(%arg0: i32, %arg1: i32) -> (i32, i32, i32) {
    %c0_i32 = arith.constant 0 : i32
    %c0_i32_0 = arith.constant 0 : i32
    return %arg0, %arg1, %c0_i32 : i32, i32, i32
  }
  func.func @transform_1(%arg0: i32, %arg1: i32) -> (i32, i32, i32) {
    %c0_i32 = arith.constant 0 : i32
    %c0_i32_0 = arith.constant 0 : i32
    %c0_i32_1 = arith.constant 0 : i32
    return %arg0, %c0_i32, %c0_i32_0 : i32, i32, i32
  }
  func.func @transform_2(%arg0: i32, %arg1: i32) -> (i32, i32) {
    %c0_i32 = arith.constant 0 : i32
    %c0_i32_0 = arith.constant 0 : i32
    %c0_i32_1 = arith.constant 0 : i32
    return %c0_i32, %c0_i32_0 : i32, i32
  }
  func.func @transform_3(%arg0: i32, %arg1: i32) -> (i32, i32) {
    %c0_i32 = arith.constant 0 : i32
    %c0_i32_0 = arith.constant 0 : i32
    %c0_i32_1 = arith.constant 0 : i32
    return %c0_i32, %c0_i32_0 : i32, i32
  }
  func.func @transform_4(%arg0: i32, %arg1: i32) -> (i32, i32) {
    %c0_i32 = arith.constant 0 : i32
    %c0_i32_0 = arith.constant 0 : i32
    %c0_i32_1 = arith.constant 0 : i32
    return %c0_i32, %c0_i32_0 : i32, i32
  }
  func.func @transform_5(%arg0: i32, %arg1: i32) -> (i32, i32) {
    %c0_i32 = arith.constant 0 : i32
    %c0_i32_0 = arith.constant 0 : i32
    %c0_i32_1 = arith.constant 0 : i32
    return %c0_i32, %c0_i32_0 : i32, i32
  }
  func.func @transform_6(%arg0: i32, %arg1: i32) -> (i32, i32) {
    %c0_i32 = arith.constant 0 : i32
    %c0_i32_0 = arith.constant 0 : i32
    %c0_i32_1 = arith.constant 0 : i32
    return %c0_i32, %c0_i32_0 : i32, i32
  }
  func.func @transform_7(%arg0: i32, %arg1: i32) -> (i32, i32) {
    %c0_i32 = arith.constant 0 : i32
    %c0_i32_0 = arith.constant 0 : i32
    %c0_i32_1 = arith.constant 0 : i32
    return %c0_i32, %c0_i32_0 : i32, i32
  }
  func.func @transform_8(%arg0: i32, %arg1: i32) -> (i32, i32) {
    %c0_i32 = arith.constant 0 : i32
    %c0_i32_0 = arith.constant 0 : i32
    %c0_i32_1 = arith.constant 0 : i32
    return %c0_i32, %c0_i32_0 : i32, i32
  }
  func.func @transform_9(%arg0: i32, %arg1: i32) -> (i32, i32) {
    %c0_i32 = arith.constant 0 : i32
    %c0_i32_0 = arith.constant 0 : i32
    %c0_i32_1 = arith.constant 0 : i32
    return %c0_i32, %c0_i32_0 : i32, i32
  }
  func.func @transform_10(%arg0: i32, %arg1: i32) -> (i32, i32) {
    %c0_i32 = arith.constant 0 : i32
    %c0_i32_0 = arith.constant 0 : i32
    %c0_i32_1 = arith.constant 0 : i32
    return %c0_i32, %c0_i32_0 : i32, i32
  }
  func.func @transform_11(%arg0: i32, %arg1: i32) -> (i32, i32) {
    %c0_i32 = arith.constant 0 : i32
    %c0_i32_0 = arith.constant 0 : i32
    %c0_i32_1 = arith.constant 0 : i32
    return %c0_i32, %c0_i32_0 : i32, i32
  }
  func.func @transform_12(%arg0: i32, %arg1: i32) -> (i32, i32) {
    %c0_i32 = arith.constant 0 : i32
    %c0_i32_0 = arith.constant 0 : i32
    %c0_i32_1 = arith.constant 0 : i32
    return %c0_i32, %c0_i32_0 : i32, i32
  }
  func.func @transform_13(%arg0: i32, %arg1: i32) -> (i32, i32) {
    %c0_i32 = arith.constant 0 : i32
    %c0_i32_0 = arith.constant 0 : i32
    %c0_i32_1 = arith.constant 0 : i32
    return %c0_i32, %c0_i32_0 : i32, i32
  }
  func.func @transform_14(%arg0: i32, %arg1: i32) -> (i32, i32) {
    %c0_i32 = arith.constant 0 : i32
    %c0_i32_0 = arith.constant 0 : i32
    %c0_i32_1 = arith.constant 0 : i32
    return %c0_i32, %c0_i32_0 : i32, i32
  }
  func.func @transform_15(%arg0: i32, %arg1: i32) -> (i32, i32) {
    %c0_i32 = arith.constant 0 : i32
    %c0_i32_0 = arith.constant 0 : i32
    %c0_i32_1 = arith.constant 0 : i32
    return %c0_i32, %c0_i32_0 : i32, i32
  }
  func.func @transform_16(%arg0: i32, %arg1: i32) -> (i32, i32) {
    %c0_i32 = arith.constant 0 : i32
    %c0_i32_0 = arith.constant 0 : i32
    %c0_i32_1 = arith.constant 0 : i32
    return %c0_i32, %c0_i32_0 : i32, i32
  }
  func.func @transform_17(%arg0: i32, %arg1: i32) -> (i32, i32, i32) {
    %c0_i32 = arith.constant 0 : i32
    %c0_i32_0 = arith.constant 0 : i32
    return %arg0, %arg1, %c0_i32 : i32, i32, i32
  }
}

</mosaic_0001>

<bundles_post_ra>
// kernel: tpu_custom_call.1
= control target key start
LH: loop header
LB: loop body
LE: loop exit
PB: predicated region body
PF: predicated region fallthrough
CT: control target
= control target key end

     0   :  { %s5044_s0 = inlined_call_operand.vmem [shape: bf16[2,256,32], index: 0, kind: input, shape index: {}]   ;;  %s5045_s1 = inlined_call_operand.vmem [shape: bf16[2,8,32], index: 1, kind: input, shape index: {}]   ;;  %s5046_s2 = inlined_call_operand.vmem [shape: bf16[32,16], index: 2, kind: input, shape index: {}]   ;;  %s5047_s3 = inlined_call_operand.vmem [shape: f32[1,16], index: 3, kind: input, shape index: {}]   ;;  %s5048_s4 = inlined_call_operand.vmem [shape: bf16[16,16], index: 4, kind: input, shape index: {}]   ;;  %s5049_s5 = inlined_call_operand.vmem [shape: f32[1,16], index: 5, kind: input, shape index: {}]   ;;  %s5050_s6 = inlined_call_operand.vmem [shape: bf16[32,16], index: 6, kind: input, shape index: {}]   ;;  %s5051_s7 = inlined_call_operand.vmem [shape: f32[1,16], index: 7, kind: input, shape index: {}]   ;;  %s5052_s8 = inlined_call_operand.vmem [shape: bf16[16,16], index: 8, kind: input, shape index: {}]   ;;  %s5053_s9 = inlined_call_operand.vmem [shape: f32[1,16], index: 9, kind: input, shape index: {}]   ;;  %s5054_s10 = inlined_call_operand.vmem [shape: bf16[32,16], index: 10, kind: input, shape index: {}]   ;;  %s5055_s11 = inlined_call_operand.vmem [shape: f32[1,16], index: 11, kind: input, shape index: {}]   ;;  %s5056_s12 = inlined_call_operand.vmem [shape: bf16[16,32], index: 12, kind: input, shape index: {}]   ;;  %s5057_s13 = inlined_call_operand.vmem [shape: f32[1,32], index: 13, kind: input, shape index: {}]   ;;  %s5058_s14 = inlined_call_operand.vmem [shape: bf16[32,128], index: 14, kind: input, shape index: {}]   ;;  %s5059_s15 = inlined_call_operand.vmem [shape: bf16[32,128], index: 15, kind: input, shape index: {}]   ;;  %s5060_s16 = inlined_call_operand.vmem [shape: f32[1,128], index: 16, kind: input, shape index: {}]   ;;  %s5061_s17 = inlined_call_operand.hbm [shape: f32[2,256,128], index: 17, kind: output, shape index: {}]  }
   0x1   :  { %5065 = sst [smem:[#allocation9_spill]] %s5044_s0 }
   0x2   :  { %5066 = sst [smem:[#allocation10_spill]] %s5045_s1 }
   0x3   :  { %5067 = sst [smem:[#allocation11_spill]] %s5046_s2 }
   0x4   :  { %5068 = sst [smem:[#allocation12_spill]] %s5047_s3 }
   0x5   :  { %22 = vsyncpa [#allocation3], 0 }
   0x6   :  { %24 = vsyncpa [#allocation3 + $0x1], 0  ;;  %s4124_s24 = smov 0   ;;  %s4126_s25 = smov 0  }
   0x7   :  { %s4128_s26 = smov 0   ;;  %s4130_s27 = smov 0  }
   0x8   :  { %s4132_s28 = smov 0   ;;  %s4134_s29 = smov 0  }
   0x9 LB: > { %5069 = sst [smem:[#allocation5_spill]] %s4015_s26  ;;  %s3150_s0 = sadd.s32 4294967295, %s4027_s29   ;;  %s4027_s29 = sphi %s4134_s29, %s30_s29   ;;  %s4023_s28 = sphi %s4132_s28, %s5085_s28   ;;  %s4019_s27 = sphi %s4130_s27, %s5081_s27   ;;  %s4015_s26 = sphi %s4128_s26, %s5080_s26   ;;  %s4011_s25 = sphi %s4126_s25, %s5084_s25   ;;  %s4007_s24 = sphi %s4124_s24, %s5083_s24  }
   0xa   : > { %5070 = sst [smem:[#allocation6_spill]] %s4023_s28  ;;  %s3151_s30 = sadd.s32 4294967294, %s4027_s29  }
   0xb   : > { %s42_s18 = sadd.s32 1, %s4023_s28  ;;  %s420_s19 = sadd.s32 1, %s4015_s26 }
   0xc   : > { %p44_p0 = scmp.ge.s32.totalorder %s42_s18, 2  ;;  %p430_p1 = scmp.ne.s32.totalorder %s4015_s26, %s4011_s25 }
   0xd   : > { %p431_p2 = scmp.eq.s32.totalorder %s3150_s0, 1  ;;  %p436_p3 = scmp.ne.s32.totalorder %s4011_s25, %s4007_s24 }
   0xe   : > { %s5087_s18 = smov (%p44_p0, %s42_s18), 0  ;;  %p437_p5 = scmp.eq.s32.totalorder %s3151_s30, 1 }
   0xf   : > { %5071 = sst [smem:[#allocation7_spill]] %s5087_s18  ;;  %p4164_p4 = por %p431_p2, %p430_p1 }
  0x10   : > { %s415_s20 = ssub.s32 %s4023_s28, %s5087_s18  ;;  %p3154_p6 = scmp.ge.s32.totalorder %s4027_s29, 1 }
  0x11   : > { %p418_p7 = scmp.eq.s32.totalorder %s415_s20, 0  ;;  %p4171_p8 = por %p437_p5, %p436_p3 }
  0x12   : > { %p520_p9 = scmp.lt.s32.totalorder %s4027_s29, 3 }
  0x13   : > { %s4177_s22 = scalar_select %p418_p7, %s4015_s26, %s420_s19  }
  0x14   : > { %p521_p10 = pnand %p3154_p6, %p520_p9 }
  0x15   : > { %5074 = sst [smem:[#allocation8_spill]] %s4177_s22  ;;  %p581_p11 = scmp.lt.s32.totalorder (!%p521_p10), %s4019_s27, 1 }
  0x16   : > { %524 = sbr.rel (%p521_p10) target bundleno = 1914 (0x77a), region = 88  ;;  %s5075_s2 = sld [smem:[#allocation11_spill]] (!%p521_p10) }
  0x17   : > { %s5076_s26 = sld [smem:[#allocation9_spill]] (!%p521_p10)  ;;  %s577_s28 = sand.u32 (!%p521_p10), 1, %s4011_s25  }
  0x18   : > { %s5077_s3 = sld [smem:[#allocation12_spill]] (!%p521_p10) }
  0x19   : > { %s5078_s22 = sld [smem:[#allocation10_spill]] (!%p521_p10) }
  0x1b   : > { %s4187_s20 = scalar_select %p581_p11, %s4019_s27, 1  ;;  %vm732_vm0 = vcmask 261120   ;;  %v3796_v2 = vld [vmem:[%s5048_s4] sm:$0xff]   ;;  %v4029_v19 = vmov 0.0   ;;  %vm4030_vm1 = vmmov 0   ;;  %vm1005_vm2 = vcmask 130048  }
  0x1c   : > { %v3778_v0 = vld [vmem:[%s5075_s2 + $0x8] sm:$0xff]   ;;  %v3779_v1 = vld [vmem:[%s5075_s2] sm:$0xff]   ;;  %vm1667_vm3 = vcmask 64512   ;;  %vm2085_vm4 = vcmask 1043456  }
  0x1d   : > { %3447 = vmatprep.subr.bf16.mxu0 %v3778_v0  ;;  %3713 = vmatprep.subr.bf16.mxu1 %v3778_v0  ;;  %s3315_s19 = sshll.u32 %s4187_s20, 7  ;;  %v3797_v37 = vld [vmem:[%s5050_s6 + $0x8] sm:$0xff]   ;;  %v3798_v47 = vld [vmem:[%s5050_s6] sm:$0xff]   ;;  %s3158_s0 = sshll.u32 %s4187_s20, 2 }
  0x1e   : > { %3448 = vmatpush3.bf16.msra.mxu0 %v3778_v0  ;;  %3715 = vmatpush3.bf16.msra.mxu1 %v3778_v0  ;;  %s4196_s18 = scalar_lea.vmem %s5076_s26, %s3315_s19  ;;  %v4237_v22 = vld [vmem:[%s5077_s3] ss:$0 sm:$0xff]  ;;  %s3155_s19 = sshll.u32 %s577_s28, 8 }
  0x1f   : > { %3449 = vmatprep.subr.bf16.mxu0 %v3779_v1  ;;  %3714 = vmatprep.subr.bf16.mxu1 %v3779_v1  ;;  %v3780_v3 = vld [vmem:[%s4196_s18] sm:$0xff]   ;;  %v3781_v4 = vld [vmem:[%s4196_s18 + $0x8] sm:$0xff]   ;;  %v3782_v5 = vld [vmem:[%s4196_s18 + $0x10] sm:$0xff]   ;;  %s593_s30 = scalar_lea.vmem %s5078_s22, %s3158_s0  ;;  %s4905_s23 = scalar_lea.vmem [#allocation2], %s3155_s19 }
  0x20   : > { %3451 = vmatprep.mubr.msk.bf16.mxu0 %vm732_vm0, %v3780_v3  ;;  %v3783_v6 = vld [vmem:[%s4196_s18 + $0x18] sm:$0xff]   ;;  %v3784_v7 = vld [vmem:[%s4196_s18 + $0x20] sm:$0xff]   ;;  %v3790_v8 = vld [vmem:[%s4196_s18 + $0x50] sm:$0xff]   ;;  %s3316_s20 = sshll.u32 %s4019_s27, 12  ;;  %s3059_s2 = sshll.u32 %s4905_s23, 4  ;;  %s4993_s2 = int_to_ptr.vmem [resolvable:$true] %s3059_s2 }
  0x21   : > { %v3791_v9 = vld [vmem:[%s4196_s18 + $0x58] sm:$0xff]   ;;  %3471 = vmatprep.mubr.msk.bf16.mxu1 %vm732_vm0, %v3790_v8  ;;  %v3792_v10 = vld [vmem:[%s4196_s18 + $0x60] sm:$0xff]   ;;  %v3785_v11 = vld [vmem:[%s4196_s18 + $0x28] sm:$0xff]   ;;  %s4991_s26 = scalar_lea.hbm %s5061_s17, %s3316_s20  ;;  %s4999_s27 = scalar_lea.sflag [#allocation3], %s577_s28 }
  0x22   : > { %3450 = vmatpush3.bf16.msra.mxu0 %v3779_v1  ;;  %3716 = vmatpush3.bf16.msra.mxu1 %v3779_v1  ;;  %v3786_v12 = vld [vmem:[%s4196_s18 + $0x30] sm:$0xff]   ;;  %v3793_v13 = vld [vmem:[%s4196_s18 + $0x68] sm:$0xff]   ;;  %v3787_v15 = vld [vmem:[%s4196_s18 + $0x38] sm:$0xff]   ;;  %s3951_s22 = scalar_lea.vmem %s4993_s2, 4096 }
  0x23   : > { %3483 = vmatprep.subr.bf16.mxu1 %v3796_v2  ;;  %v3794_v14 = vld [vmem:[%s4196_s18 + $0x70] sm:$0xff]   ;;  %v3788_v16 = vld [vmem:[%s4196_s18 + $0x40] sm:$0xff]   ;;  %v3795_v17 = vld [vmem:[%s4196_s18 + $0x78] sm:$0xff]   ;;  %3525 = vmatprep.subr.bf16.mxu0 %v4029_v19  ;;  %p3952_p12 = scmp.ne.s32.totalorder %s4993_s2, %s3951_s22 }
  0x24   : > { %v3789_v18 = vld [vmem:[%s4196_s18 + $0x48] sm:$0xff]  }
  0x25   : > { %3452 = vmatmul.mubr.msk.bf16.vlgmr.msra.gmra.mxu0 %vm732_vm0, %v3781_v4  ;;  %3472 = vmatmul.mubr.msk.bf16.vlgmr.msra.gmra.mxu1 %vm732_vm0, %v3791_v9  ;;  %p3953_p13 = pnand %p3952_p12, %p4164_p4 }
  0x26   : > { %3455 = vmatprep.mubr.msk.bf16.mxu0 %vm732_vm0, %v3782_v5  ;;  %3475 = vmatprep.mubr.msk.bf16.mxu1 %vm732_vm0, %v3792_v10 }
  0x27   : > { %3484 = vmatpush3.bf16.msra.mxu1 %v3796_v2  ;;  %p3954_p0 = pneg %p3953_p13 }
  0x28   : > { %3517 = vmatprep.subr.bf16.mxu1 %v4029_v19 }
  0x2d   : > { %3456 = vmatmul.mubr.msk.bf16.gmra.mxu0 %vm732_vm0, %v3783_v6  ;;  %3476 = vmatmul.mubr.msk.bf16.gmra.mxu1 %vm732_vm0, %v3793_v13 }
  0x2e   : > { %3459 = vmatprep.mubr.msk.bf16.mxu0 %vm732_vm0, %v3784_v7  ;;  %3479 = vmatprep.mubr.msk.bf16.mxu1 %vm732_vm0, %v3794_v14 }
  0x35   : > { %3460 = vmatmul.mubr.msk.bf16.gmra.mxu0 %vm732_vm0, %v3785_v11  ;;  %3480 = vmatmul.mubr.msk.bf16.gmra.mxu1 %vm732_vm0, %v3795_v17 }
  0x36   : > { %3463 = vmatprep.mubr.msk.bf16.mxu0 %vm732_vm0, %v3786_v12 }
  0x3d   : > { %3464 = vmatmul.mubr.msk.bf16.gmra.mxu0 %vm732_vm0, %v3787_v15 }
  0x3e   : > { %3467 = vmatprep.mubr.msk.bf16.mxu0 %vm732_vm0, %v3788_v16 }
  0x45   : > { %3468 = vmatmul.mubr.msk.bf16.gmra.mxu0 %vm732_vm0, %v3789_v18 }
  0x46   : > { %3527 = vmatprep.mubr.msk.bf16.mxu0 %vm4030_vm1, %v4029_v19 }
  0xe5   : > { %v3453_v20 = vpop.f32.mrf.mxu0  ;;  %v4243_v33 = vpop.f32.mrf.mxu1 }
  0xe6   : > { %v824_v26 = vadd.f32 %v3453_v20, %v4237_v22 }
  0xe7   : > { %v815_v21 = vpop.f32.mrf.mxu0  ;;  %v895_v38 = vpop.f32.mrf.mxu1 }
  0xe8   : > { %v816_v24 = vadd.f32 %v4237_v22, %v815_v21  ;;  %v944_v34 = vmax.f32 %v824_v26, 0.0  ;;  %v896_v26 = vadd.f32 %v4237_v22, %v895_v38 }
  0xe9   : > { %v3454_v23 = vpop.f32.mrf.mxu0  ;;  %v4251_v43 = vpop.f32.mrf.mxu1 }
  0xea   : > { %v827_v25 = vadd.f32 %v3454_v23, %v4237_v22  ;;  %v942_v31 = vmax.f32 %v816_v24, 0.0 }
  0xeb   : > { %v818_v27 = vpop.f32.mrf.mxu0  ;;  %v898_v50 = vpop.f32.mrf.mxu1 }
  0xec   : > { %v819_v28 = vadd.f32 %v4237_v22, %v818_v27  ;;  %v945_v29 = vmax.f32 %v827_v25, 0.0  ;;  %v899_v27 = vadd.f32 %v4237_v22, %v898_v50 }
  0xed   : > { %v3457_v30 = vpop.f32.mrf.mxu0  ;;  %v4260_v58 = vpop.f32.mrf.mxu1 }
  0xee   : > { %v943_v32 = vmax.f32 %v819_v28, 0.0  ;;  %v975_v39 = vpack.c.bf16 %v945_v29, %v944_v34  ;;  %v840_v44 = vadd.f32 %v3457_v30, %v4237_v22  ;;  %v963_v38 = vmax.f32 %v899_v27, 0.0 }
  0xef   : > { %v831_v35 = vpop.f32.mrf.mxu0  ;;  %v911_v2 = vpop.f32.mrf.mxu1 }
  0xf0   : > { %v974_v36 = vpack.c.bf16 %v943_v32, %v942_v31  ;;  %v832_v41 = vadd.f32 %v4237_v22, %v831_v35  ;;  %v948_v53 = vmax.f32 %v840_v44, 0.0 }
  0xf1   : > { %v3458_v40 = vpop.f32.mrf.mxu0  ;;  %v3478_v10 = vpop.f32.mrf.mxu1 }
  0xf2   : > { %v843_v42 = vadd.f32 %v3458_v40, %v4237_v22  ;;  %3485 = vmatprep.mubr.msk.bf16.mxu1 %vm1005_vm2, %v974_v36  ;;  %v946_v51 = vmax.f32 %v832_v41, 0.0  ;;  %v962_v36 = vmax.f32 %v896_v26, 0.0 }
  0xf3   : > { %v834_v45 = vpop.f32.mrf.mxu0  ;;  %3486 = vmatmul.mubr.msk.bf16.vlgmr.msra.gmra.mxu1 %vm1005_vm2, %v975_v39  ;;  %v914_v18 = vpop.f32.mrf.mxu1 }
  0xf4   : > { %v835_v46 = vadd.f32 %v4237_v22, %v834_v45  ;;  %3518 = vmatpush3.bf16.msra.mxu1 %v3797_v37  ;;  %v949_v48 = vmax.f32 %v843_v42, 0.0 }
  0xf5   : > { %v3461_v49 = vpop.f32.mrf.mxu0  ;;  %3519 = vmatprep.subr.bf16.mxu1 %v4029_v19  ;;  %v3481_v30 = vpop.f32.mrf.mxu1 }
  0xf6   : > { %v947_v52 = vmax.f32 %v835_v46, 0.0  ;;  %v977_v56 = vpack.c.bf16 %v949_v48, %v948_v53  ;;  %v856_v61 = vadd.f32 %v3461_v49, %v4237_v22  ;;  %v984_v46 = vpack.c.bf16 %v963_v38, %v962_v36 }
  0xf7   : > { %v847_v54 = vpop.f32.mrf.mxu0  ;;  %v927_v40 = vpop.f32.mrf.mxu1  ;;  %v915_v48 = vadd.f32 %v4237_v22, %v914_v18  ;;  %v904_v49 = vadd.f32 %v4243_v33, %v4237_v22 }
  0xf8   : > { %v976_v55 = vpack.c.bf16 %v947_v52, %v946_v51  ;;  %3520 = vmatpush3.bf16.msra.mxu1 %v3798_v47  ;;  %v848_v59 = vadd.f32 %v4237_v22, %v847_v54  ;;  %v952_v5 = vmax.f32 %v856_v61, 0.0  ;;  %v912_v47 = vadd.f32 %v4237_v22, %v911_v2 }
  0xf9   : > { %v3462_v57 = vpop.f32.mrf.mxu0  ;;  %3531 = vmatprep.subr.bf16.mxu1 %v4029_v19  ;;  %v907_v51 = vadd.f32 %v4251_v43, %v4237_v22  ;;  %v3482_v52 = vpop.f32.mrf.mxu1  ;;  %v967_v54 = vmax.f32 %v915_v48, 0.0  ;;  %v920_v43 = vadd.f32 %v4260_v58, %v4237_v22 }
  0xfa   : > { %v859_v60 = vadd.f32 %v3462_v57, %v4237_v22  ;;  %3489 = vmatprep.mubr.msk.bf16.mxu1 %vm1005_vm2, %v976_v55  ;;  %v950_v3 = vmax.f32 %v848_v59, 0.0  ;;  %v966_v53 = vmax.f32 %v912_v47, 0.0  ;;  %v964_v55 = vmax.f32 %v904_v49, 0.0 }
  0xfb   : > { %v850_v62 = vpop.f32.mrf.mxu0  ;;  %3490 = vmatmul.mubr.msk.bf16.gmra.mxu1 %vm1005_vm2, %v977_v56  ;;  %v965_v56 = vmax.f32 %v907_v51, 0.0  ;;  %v930_v57 = vpop.f32.mrf.mxu1 }
  0xfc   : > { %v851_v63 = vadd.f32 %v4237_v22, %v850_v62  ;;  %v953_v0 = vmax.f32 %v859_v60, 0.0  ;;  %v986_v59 = vpack.c.bf16 %v967_v54, %v966_v53  ;;  %v928_v60 = vadd.f32 %v4237_v22, %v927_v40 }
  0xfd   : > { %v3465_v1 = vpop.f32.mrf.mxu0  ;;  %v931_v33 = vadd.f32 %v4237_v22, %v930_v57  ;;  %v985_v61 = vpack.c.bf16 %v965_v56, %v964_v55  ;;  %v923_v62 = vadd.f32 %v3478_v10, %v4237_v22  ;;  %v4322_v10 = vld [vmem:[%s5049_s5] ss:$0 sm:$0xff] }
  0xfe   : > { %v951_v4 = vmax.f32 %v851_v63, 0.0  ;;  %v979_v8 = vpack.c.bf16 %v953_v0, %v952_v5  ;;  %v872_v13 = vadd.f32 %v3465_v1, %v4237_v22  ;;  %v970_v63 = vmax.f32 %v928_v60, 0.0 }
  0xff   : > { %v863_v6 = vpop.f32.mrf.mxu0  ;;  %v971_v0 = vmax.f32 %v931_v33, 0.0  ;;  %v968_v1 = vmax.f32 %v920_v43, 0.0  ;;  %v969_v2 = vmax.f32 %v923_v62, 0.0  ;;  %v936_v5 = vadd.f32 %v3481_v30, %v4237_v22 }
 0x100   : > { %v978_v7 = vpack.c.bf16 %v951_v4, %v950_v3  ;;  %v864_v11 = vadd.f32 %v4237_v22, %v863_v6  ;;  %v956_v23 = vmax.f32 %v872_v13, 0.0  ;;  %v939_v6 = vadd.f32 %v3482_v52, %v4237_v22 }
 0x101   : > { %v3466_v9 = vpop.f32.mrf.mxu0  ;;  %v988_v3 = vpack.c.bf16 %v971_v0, %v970_v63  ;;  %v987_v4 = vpack.c.bf16 %v969_v2, %v968_v1  ;;  %v972_v58 = vmax.f32 %v936_v5, 0.0 }
 0x102   : > { %v875_v12 = vadd.f32 %v3466_v9, %v4237_v22  ;;  %3493 = vmatprep.mubr.msk.bf16.mxu1 %vm1005_vm2, %v978_v7  ;;  %v954_v20 = vmax.f32 %v864_v11, 0.0  ;;  %v973_v7 = vmax.f32 %v939_v6, 0.0  ;;  %v4310_v9 = vld [vmem:[%s593_s30] sm:$0xf]  ;;  %s4031_s30 = smov [#allocation2]  }
 0x103   : > { %v866_v14 = vpop.f32.mrf.mxu0  ;;  %3494 = vmatmul.mubr.msk.bf16.gmra.mxu1 %vm1005_vm2, %v979_v8  ;;  %s3955_s19 = sshll.u32 %s4031_s30, 4  ;;  %s3956_s19 = int_to_ptr.vmem [resolvable:$false] %s3955_s19 }
 0x104   : > { %v867_v15 = vadd.f32 %v4237_v22, %v866_v14  ;;  %v957_v16 = vmax.f32 %v875_v12, 0.0  ;;  %v989_v8 = vpack.c.bf16 %v973_v7, %v972_v58  ;;  %s3957_s20 = scalar_lea.vmem %s3956_s19, 8192  ;;  %p3958_p1 = scmp.lt.s32.totalorder %s4993_s2, %s3956_s19 }
 0x105   : > { %v3469_v17 = vpop.f32.mrf.mxu0  ;;  %p3959_p2 = scmp.lt.s32.totalorder %s3957_s20, %s3951_s22 }
 0x106   : > { %v955_v21 = vmax.f32 %v867_v15, 0.0  ;;  %v981_v28 = vpack.c.bf16 %v957_v16, %v956_v23  ;;  %v888_v34 = vadd.f32 %v3469_v17, %v4237_v22 }
 0x107   : > { %v879_v24 = vpop.f32.mrf.mxu0  ;;  %p3960_p3 = por %p3959_p2, %p3958_p1 }
 0x108   : > { %v980_v25 = vpack.c.bf16 %v955_v21, %v954_v20  ;;  %v880_v31 = vadd.f32 %v4237_v22, %v879_v24  ;;  %v960_v44 = vmax.f32 %v888_v34, 0.0 }
 0x109   : > { %v3470_v29 = vpop.f32.mrf.mxu0  ;;  %p3961_p5 = pnand %p3960_p3, %p3954_p0 }
 0x10a   : > { %v891_v32 = vadd.f32 %v3470_v29, %v4237_v22  ;;  %3497 = vmatprep.mubr.msk.bf16.mxu1 %vm1005_vm2, %v980_v25  ;;  %v958_v41 = vmax.f32 %v880_v31, 0.0 }
 0x10b   : > { %v882_v35 = vpop.f32.mrf.mxu0  ;;  %3498 = vmatmul.mubr.msk.bf16.gmra.mxu1 %vm1005_vm2, %v981_v28 }
 0x10c   : > { %v883_v37 = vadd.f32 %v4237_v22, %v882_v35  ;;  %v961_v39 = vmax.f32 %v891_v32, 0.0  ;;  %v3799_v22 = vld [vmem:[%s5052_s8] sm:$0xff]  }
 0x10d   : > { %3526 = vmatpush3.bf16.msra.mxu0 %v3799_v22 }
 0x10e   : > { %v959_v42 = vmax.f32 %v883_v37, 0.0  ;;  %v983_v50 = vpack.c.bf16 %v961_v39, %v960_v44 }
 0x110   : > { %v982_v45 = vpack.c.bf16 %v959_v42, %v958_v41 }
 0x112   : > { %3501 = vmatprep.mubr.msk.bf16.mxu1 %vm1005_vm2, %v982_v45 }
 0x113   : > { %3502 = vmatmul.mubr.msk.bf16.gmra.mxu1 %vm1005_vm2, %v983_v50 }
 0x114   : > { %3505 = vmatprep.mubr.msk.bf16.mxu1 %vm1005_vm2, %v984_v46 }
 0x11b   : > { %3506 = vmatmul.mubr.msk.bf16.gmra.mxu1 %vm1005_vm2, %v985_v61 }
 0x11c   : > { %3509 = vmatprep.mubr.msk.bf16.mxu1 %vm1005_vm2, %v986_v59 }
 0x123   : > { %3510 = vmatmul.mubr.msk.bf16.gmra.mxu1 %vm1005_vm2, %v987_v4 }
 0x124   : > { %3513 = vmatprep.mubr.msk.bf16.mxu1 %vm1005_vm2, %v988_v3 }
 0x12b   : > { %3514 = vmatmul.mubr.msk.bf16.gmra.mxu1 %vm1005_vm2, %v989_v8 }
 0x12c   : > { %3521 = vmatprep.mubr.msk.bf16.mxu1 %vm4030_vm1, %v4029_v19 }
 0x133   : > { %3522 = vmatmul.mubr.msk.bf16.vlgmr.msra.gmra.mxu1 %vm732_vm0, %v4310_v9 }
 0x134   : > { %3535 = vmatprep.mubr.msk.bf16.mxu1 %vm4030_vm1, %v4029_v19 }
 0x1b3   : > { %v3487_v11 = vpop.f32.mrf.mxu1 }
 0x1b4   : > { %v1097_v12 = vadd.f32 %v3487_v11, %v4322_v10 }
 0x1b5   : > { %v4325_v13 = vpop.f32.mrf.mxu1 }
 0x1b6   : > { %v1217_v17 = vmax.f32 %v1097_v12, 0.0 }
 0x1b7   : > { %v3488_v14 = vpop.f32.mrf.mxu1 }
 0x1b8   : > { %v1100_v15 = vadd.f32 %v3488_v14, %v4322_v10 }
 0x1b9   : > { %v4328_v16 = vpop.f32.mrf.mxu1 }
 0x1ba   : > { %v1218_v18 = vmax.f32 %v1100_v15, 0.0 }
 0x1bb   : > { %v3491_v20 = vpop.f32.mrf.mxu1 }
 0x1bc   : > { %v4330_v21 = vpack.c.bf16 %v1218_v18, %v1217_v17  ;;  %v1113_v23 = vadd.f32 %v3491_v20, %v4322_v10 }
 0x1bd   : > { %v1104_v24 = vpop.f32.mrf.mxu1 }
 0x1be   : > { %v1105_v25 = vadd.f32 %v4322_v10, %v1104_v24  ;;  %v1221_v29 = vmax.f32 %v1113_v23, 0.0 }
 0x1bf   : > { %v3492_v26 = vpop.f32.mrf.mxu1 }
 0x1c0   : > { %v1116_v27 = vadd.f32 %v3492_v26, %v4322_v10  ;;  %v1219_v34 = vmax.f32 %v1105_v25, 0.0 }
 0x1c1   : > { %v1107_v28 = vpop.f32.mrf.mxu1 }
 0x1c2   : > { %v1222_v30 = vmax.f32 %v1116_v27, 0.0  ;;  %v1108_v31 = vadd.f32 %v4322_v10, %v1107_v28 }
 0x1c3   : > { %v3495_v32 = vpop.f32.mrf.mxu1 }
 0x1c4   : > { %v4336_v35 = vpack.c.bf16 %v1222_v30, %v1221_v29  ;;  %v1220_v36 = vmax.f32 %v1108_v31, 0.0  ;;  %v1129_v37 = vadd.f32 %v3495_v32, %v4322_v10 }
 0x1c5   : > { %v1120_v38 = vpop.f32.mrf.mxu1 }
 0x1c6   : > { %v4339_v39 = vpack.c.bf16 %v1220_v36, %v1219_v34  ;;  %v1121_v40 = vadd.f32 %v4322_v10, %v1120_v38  ;;  %v1225_v45 = vmax.f32 %v1129_v37, 0.0 }
 0x1c7   : > { %v3496_v41 = vpop.f32.mrf.mxu1 }
 0x1c8   : > { %v1132_v42 = vadd.f32 %v3496_v41, %v4322_v10  ;;  %v1223_v49 = vmax.f32 %v1121_v40, 0.0 }
 0x1c9   : > { %v1123_v44 = vpop.f32.mrf.mxu1 }
 0x1ca   : > { %v1226_v46 = vmax.f32 %v1132_v42, 0.0  ;;  %v1124_v47 = vadd.f32 %v4322_v10, %v1123_v44 }
 0x1cb   : > { %v3499_v48 = vpop.f32.mrf.mxu1 }
 0x1cc   : > { %v4344_v50 = vpack.c.bf16 %v1226_v46, %v1225_v45  ;;  %v1224_v51 = vmax.f32 %v1124_v47, 0.0  ;;  %v1145_v52 = vadd.f32 %v3499_v48, %v4322_v10 }
 0x1cd   : > { %v1136_v53 = vpop.f32.mrf.mxu1 }
 0x1ce   : > { %v4347_v54 = vpack.c.bf16 %v1224_v51, %v1223_v49  ;;  %v1137_v55 = vadd.f32 %v4322_v10, %v1136_v53  ;;  %v1229_v60 = vmax.f32 %v1145_v52, 0.0 }
 0x1cf   : > { %v3500_v56 = vpop.f32.mrf.mxu1 }
 0x1d0   : > { %v1148_v57 = vadd.f32 %v3500_v56, %v4322_v10  ;;  %v1227_v62 = vmax.f32 %v1137_v55, 0.0 }
 0x1d1   : > { %v1139_v59 = vpop.f32.mrf.mxu1 }
 0x1d2   : > { %v1230_v33 = vmax.f32 %v1148_v57, 0.0  ;;  %v1140_v61 = vadd.f32 %v4322_v10, %v1139_v59 }
 0x1d3   : > { %v3503_v43 = vpop.f32.mrf.mxu1 }
 0x1d4   : > { %v4352_v63 = vpack.c.bf16 %v1230_v33, %v1229_v60  ;;  %v1228_v0 = vmax.f32 %v1140_v61, 0.0  ;;  %v1161_v1 = vadd.f32 %v3503_v43, %v4322_v10  ;;  %v1092_v33 = vadd.f32 %v4322_v10, %v4328_v16  ;;  %v3212_v43 = vld [vmem:[%s5051_s7] ss:$0 sm:$0xff] }
 0x1d5   : > { %v1152_v2 = vpop.f32.mrf.mxu1 }
 0x1d6   : > { %v4355_v3 = vpack.c.bf16 %v1228_v0, %v1227_v62  ;;  %v1153_v4 = vadd.f32 %v4322_v10, %v1152_v2  ;;  %v1233_v7 = vmax.f32 %v1161_v1, 0.0  ;;  %v1089_v2 = vadd.f32 %v4322_v10, %v4325_v13 }
 0x1d7   : > { %v3504_v5 = vpop.f32.mrf.mxu1 }
 0x1d8   : > { %v1164_v6 = vadd.f32 %v3504_v5, %v4322_v10  ;;  %v1231_v12 = vmax.f32 %v1153_v4, 0.0 }
 0x1d9   : > { %v1155_v58 = vpop.f32.mrf.mxu1 }
 0x1da   : > { %v1234_v8 = vmax.f32 %v1164_v6, 0.0  ;;  %v1156_v22 = vadd.f32 %v4322_v10, %v1155_v58 }
 0x1db   : > { %v3507_v11 = vpop.f32.mrf.mxu1 }
 0x1dc   : > { %v4360_v14 = vpack.c.bf16 %v1234_v8, %v1233_v7  ;;  %v1232_v15 = vmax.f32 %v1156_v22, 0.0  ;;  %v1177_v17 = vadd.f32 %v3507_v11, %v4322_v10  ;;  %v1216_v8 = vmax.f32 %v1092_v33, 0.0 }
 0x1dd   : > { %v1168_v18 = vpop.f32.mrf.mxu1 }
 0x1de   : > { %v4363_v20 = vpack.c.bf16 %v1232_v15, %v1231_v12  ;;  %v1169_v23 = vadd.f32 %v4322_v10, %v1168_v18  ;;  %v1237_v27 = vmax.f32 %v1177_v17, 0.0  ;;  %v1215_v12 = vmax.f32 %v1089_v2, 0.0 }
 0x1df   : > { %v3508_v24 = vpop.f32.mrf.mxu1 }
 0x1e0   : > { %v1180_v25 = vadd.f32 %v3508_v24, %v4322_v10  ;;  %v1235_v31 = vmax.f32 %v1169_v23, 0.0  ;;  %v1438_v18 = vpack.c.bf16 %v1216_v8, %v1215_v12 }
 0x1e1   : > { %v1171_v26 = vpop.f32.mrf.mxu1 }
 0x1e2   : > { %v1238_v28 = vmax.f32 %v1180_v25, 0.0  ;;  %v1172_v29 = vadd.f32 %v4322_v10, %v1171_v26 }
 0x1e3   : > { %v3511_v30 = vpop.f32.mrf.mxu1 }
 0x1e4   : > { %v4368_v32 = vpack.c.bf16 %v1238_v28, %v1237_v27  ;;  %v1236_v34 = vmax.f32 %v1172_v29, 0.0  ;;  %v1193_v36 = vadd.f32 %v3511_v30, %v4322_v10 }
 0x1e5   : > { %v1184_v37 = vpop.f32.mrf.mxu1 }
 0x1e6   : > { %v1448_v38 = vpack.c.bf16 %v1236_v34, %v1235_v31  ;;  %v1185_v40 = vadd.f32 %v4322_v10, %v1184_v37  ;;  %v1241_v45 = vmax.f32 %v1193_v36, 0.0 }
 0x1e7   : > { %v3512_v41 = vpop.f32.mrf.mxu1 }
 0x1e8   : > { %v1196_v42 = vadd.f32 %v3512_v41, %v4322_v10  ;;  %v1239_v49 = vmax.f32 %v1185_v40, 0.0 }
 0x1e9   : > { %v1187_v44 = vpop.f32.mrf.mxu1 }
 0x1ea   : > { %v1242_v46 = vmax.f32 %v1196_v42, 0.0  ;;  %v1188_v47 = vadd.f32 %v4322_v10, %v1187_v44 }
 0x1eb   : > { %v3515_v48 = vpop.f32.mrf.mxu1 }
 0x1ec   : > { %v1451_v51 = vpack.c.bf16 %v1242_v46, %v1241_v45  ;;  %v1240_v52 = vmax.f32 %v1188_v47, 0.0  ;;  %v1209_v53 = vadd.f32 %v3515_v48, %v4322_v10 }
 0x1ed   : > { %v1200_v55 = vpop.f32.mrf.mxu1 }
 0x1ee   : > { %v1450_v56 = vpack.c.bf16 %v1240_v52, %v1239_v49  ;;  %v1201_v57 = vadd.f32 %v4322_v10, %v1200_v55  ;;  %v1245_v62 = vmax.f32 %v1209_v53, 0.0 }
 0x1ef   : > { %v3516_v59 = vpop.f32.mrf.mxu1 }
 0x1f0   : > { %v1212_v60 = vadd.f32 %v3516_v59, %v4322_v10  ;;  %v1243_v5 = vmax.f32 %v1201_v57, 0.0 }
 0x1f1   : > { %v1203_v61 = vpop.f32.mrf.mxu1 }
 0x1f2   : > { %v1246_v0 = vmax.f32 %v1212_v60, 0.0  ;;  %v1204_v1 = vadd.f32 %v4322_v10, %v1203_v61  ;;  %v3216_v10 = vld [vmem:[%s5053_s9] ss:$0 sm:$0xff] }
 0x1f3   : > { %v1307_v4 = vpop.f32.mrf.mxu1 }
 0x1f4   : > { %v1453_v6 = vpack.c.bf16 %v1246_v0, %v1245_v62  ;;  %v1244_v58 = vmax.f32 %v1204_v1, 0.0  ;;  %v1308_v7 = vadd.f32 %v3212_v43, %v1307_v4 }
 0x1f5   : > { %v3523_v22 = vpop.f32.mrf.mxu1 }
 0x1f6   : > { %v1452_v16 = vpack.c.bf16 %v1244_v58, %v1243_v5  ;;  %v1313_v11 = vmax.f32 %v1308_v7, 0.0 }
 0x1f7   : > { %v1310_v15 = vpop.f32.mrf.mxu1 }
 0x1f8   : > { %v1314_v17 = vpack.c.bf16 %v1313_v11, %v1313_v11 }
 0x1f9   : > { %v3524_v23 = vpop.f32.mrf.mxu1 }
 0x1fa   : > { %3528 = vmatmul.mubr.msk.bf16.vlgmr.msra.gmra.mxu0 %vm1005_vm2, %v1314_v17 }
 0x1fb   : > { %3541 = vmatprep.mubr.msk.bf16.mxu0 %vm1005_vm2, %v1438_v18 }
 0x2ba   : > { %v1367_v13 = vpop.f32.mrf.mxu0 }
 0x2bb   : > { %v1368_v24 = vadd.f32 %v3216_v10, %v1367_v13 }
 0x2bc   : > { %v3529_v25 = vpop.f32.mrf.mxu0 }
 0x2bd   : > { %v1373_v26 = vmax.f32 %v1368_v24, 0.0 }
 0x2be   : > { %v1370_v27 = vpop.f32.mrf.mxu0 }
 0x2bf   : > { %v1454_v28 = vpack.c.bf16 %v1373_v26, %v1373_v26 }
 0x2c0   : > { %v3530_v29 = vpop.f32.mrf.mxu0 }
 0x2c1   : > { %3717 = vmatprep.subr.msk.bf16.mxu0 %vm1005_vm2, %v1454_v28  ;;  %v1504_v30 = vsel %vm1005_vm2, %v1454_v28, 0 }
 0x2c2   : > { %3540 = vmatpush3.bf16.xpose.msra.mxu0 %v1504_v30 }
 0x2c9   : > { %3542 = vmatmul.mubr.msk.bf16.vlgmr.msra.gmra.mxu0 %vm1005_vm2, %v4330_v21  ;;  %v3800_v21 = vld [vmem:[%s5054_s10 + $0x8] sm:$0xff]  }
 0x2ca   : > { %3545 = vmatprep.mubr.msk.bf16.mxu0 %vm1005_vm2, %v4339_v39  ;;  %3532 = vmatpush3.bf16.msra.mxu1 %v3800_v21 }
 0x2cb   : > { %3533 = vmatprep.subr.bf16.mxu1 %v4029_v19 }
 0x2d1   : > { %3546 = vmatmul.mubr.msk.bf16.gmra.mxu0 %vm1005_vm2, %v4336_v35  ;;  %v3801_v35 = vld [vmem:[%s5054_s10] sm:$0xff]  }
 0x2d2   : > { %3549 = vmatprep.mubr.msk.bf16.mxu0 %vm1005_vm2, %v4347_v54  ;;  %3534 = vmatpush3.bf16.msra.mxu1 %v3801_v35 }
 0x2d5   : > { %3536 = vmatmul.mubr.msk.bf16.vlgmr.msra.gmra.mxu1 %vm732_vm0, %v4310_v9 }
 0x2d9   : > { %3550 = vmatmul.mubr.msk.bf16.gmra.mxu0 %vm1005_vm2, %v4344_v50 }
 0x2da   : > { %3553 = vmatprep.mubr.msk.bf16.mxu0 %vm1005_vm2, %v4355_v3 }
 0x2e1   : > { %3554 = vmatmul.mubr.msk.bf16.gmra.mxu0 %vm1005_vm2, %v4352_v63 }
 0x2e2   : > { %3557 = vmatprep.mubr.msk.bf16.mxu0 %vm1005_vm2, %v4363_v20 }
 0x2e9   : > { %3558 = vmatmul.mubr.msk.bf16.gmra.mxu0 %vm1005_vm2, %v4360_v14 }
 0x2ea   : > { %3561 = vmatprep.mubr.msk.bf16.mxu0 %vm1005_vm2, %v1448_v38 }
 0x2f1   : > { %3562 = vmatmul.mubr.msk.bf16.gmra.mxu0 %vm1005_vm2, %v4368_v32 }
 0x2f2   : > { %3565 = vmatprep.mubr.msk.bf16.mxu0 %vm1005_vm2, %v1450_v56 }
 0x2f9   : > { %3566 = vmatmul.mubr.msk.bf16.gmra.mxu0 %vm1005_vm2, %v1451_v51 }
 0x2fa   : > { %3569 = vmatprep.mubr.msk.bf16.mxu0 %vm1005_vm2, %v1452_v16 }
 0x301   : > { %3570 = vmatmul.mubr.msk.bf16.gmra.mxu0 %vm1005_vm2, %v1453_v6 }
 0x389   : > { %v4426_v39 = vpop.f32.mrf.mxu0 }
 0x38a   : > { %v1674_v50 = vsel %vm1667_vm3, %v4426_v39, -inf }
 0x38b   : > { %1675 = vmax.xlane.f32.xlu1 %v1674_v50  ;;  %v4430_v54 = vpop.f32.mrf.mxu0 }
 0x38c   : > { %v1668_v63 = vsel %vm1667_vm3, %v4430_v54, -inf }
 0x38d   : > { %1669 = vmax.xlane.f32.xlu0 %v1668_v63  ;;  %v4434_v3 = vpop.f32.mrf.mxu0 }
 0x38e   : > { %v1677_v19 = vsel %vm1667_vm3, %v4434_v3, -inf }
 0x38f   : > { %1678 = vmax.xlane.f32.xlu1 %v1677_v19  ;;  %v4438_v9 = vpop.f32.mrf.mxu0 }
 0x390   : > { %v1671_v14 = vsel %vm1667_vm3, %v4438_v9, -inf }
 0x391   : > { %1672 = vmax.xlane.f32.xlu0 %v1671_v14  ;;  %v4442_v20 = vpop.f32.mrf.mxu0 }
 0x392   : > { %v1686_v37 = vsel %vm1667_vm3, %v4442_v20, -inf }
 0x393   : > { %v4444_v31 = vpop.f32.mrf.mxu0 }
 0x394   : > { %v1680_v32 = vsel %vm1667_vm3, %v4444_v31, -inf }
 0x395   : > { %1681 = vmax.xlane.f32.xlu0 %v1680_v32  ;;  %v4448_v34 = vpop.f32.mrf.mxu0 }
 0x396   : > { %v1689_v42 = vsel %vm1667_vm3, %v4448_v34, -inf }
 0x397   : > { %v4450_v36 = vpop.f32.mrf.mxu0 }
 0x398   : > { %v1683_v38 = vsel %vm1667_vm3, %v4450_v36, -inf }
 0x399   : > { %1687 = vmax.xlane.f32.xlu0 %v1686_v37  ;;  %1684 = vmax.xlane.f32.xlu1 %v1683_v38  ;;  %v4456_v40 = vpop.f32.mrf.mxu0 }
 0x39a   : > { %v1698_v47 = vsel %vm1667_vm3, %v4456_v40, -inf }
 0x39b   : > { %v4458_v41 = vpop.f32.mrf.mxu0 }
 0x39c   : > { %v1692_v44 = vsel %vm1667_vm3, %v4458_v41, -inf }
 0x39d   : > { %1690 = vmax.xlane.f32.xlu1 %v1689_v42  ;;  %1693 = vmax.xlane.f32.xlu0 %v1692_v44  ;;  %v4464_v45 = vpop.f32.mrf.mxu0 }
 0x39e   : > { %v1701_v52 = vsel %vm1667_vm3, %v4464_v45, -inf }
 0x39f   : > { %v4466_v46 = vpop.f32.mrf.mxu0 }
 0x3a0   : > { %v1695_v48 = vsel %vm1667_vm3, %v4466_v46, -inf }
 0x3a1   : > { %1699 = vmax.xlane.f32.xlu0 %v1698_v47  ;;  %1696 = vmax.xlane.f32.xlu1 %v1695_v48  ;;  %v4472_v49 = vpop.f32.mrf.mxu0 }
 0x3a2   : > { %v1710_v57 = vsel %vm1667_vm3, %v4472_v49, -inf }
 0x3a3   : > { %v4474_v51 = vpop.f32.mrf.mxu0 }
 0x3a4   : > { %v1704_v53 = vsel %vm1667_vm3, %v4474_v51, -inf }
 0x3a5   : > { %1702 = vmax.xlane.f32.xlu1 %v1701_v52  ;;  %1705 = vmax.xlane.f32.xlu0 %v1704_v53  ;;  %v4480_v55 = vpop.f32.mrf.mxu0 }
 0x3a6   : > { %v1713_v61 = vsel %vm1667_vm3, %v4480_v55, -inf }
 0x3a7   : > { %v4482_v56 = vpop.f32.mrf.mxu0 }
 0x3a8   : > { %v1707_v59 = vsel %vm1667_vm3, %v4482_v56, -inf }
 0x3a9   : > { %1711 = vmax.xlane.f32.xlu0 %v1710_v57  ;;  %1708 = vmax.xlane.f32.xlu1 %v1707_v59  ;;  %v4488_v60 = vpop.f32.mrf.mxu0 }
 0x3aa   : > { %v1722_v1 = vsel %vm1667_vm3, %v4488_v60, -inf }
 0x3ab   : > { %v4490_v33 = vpop.f32.mrf.mxu0 }
 0x3ac   : > { %v1716_v43 = vsel %vm1667_vm3, %v4490_v33, -inf }
 0x3ad   : > { %1714 = vmax.xlane.f32.xlu1 %v1713_v61  ;;  %1717 = vmax.xlane.f32.xlu0 %v1716_v43  ;;  %v4496_v62 = vpop.f32.mrf.mxu0 }
 0x3ae   : > { %v1725_v6 = vsel %vm1667_vm3, %v4496_v62, -inf }
 0x3af   : > { %v4498_v0 = vpop.f32.mrf.mxu0 }
 0x3b0   : > { %v1719_v2 = vsel %vm1667_vm3, %v4498_v0, -inf }
 0x3b1   : > { %1723 = vmax.xlane.f32.xlu0 %v1722_v1  ;;  %1720 = vmax.xlane.f32.xlu1 %v1719_v2  ;;  %v4504_v4 = vpop.f32.mrf.mxu0 }
 0x3b2   : > { %v1734_v22 = vsel %vm1667_vm3, %v4504_v4, -inf }
 0x3b3   : > { %v4506_v5 = vpop.f32.mrf.mxu0 }
 0x3b4   : > { %v1728_v58 = vsel %vm1667_vm3, %v4506_v5, -inf }
 0x3b5   : > { %1726 = vmax.xlane.f32.xlu1 %v1725_v6  ;;  %1729 = vmax.xlane.f32.xlu0 %v1728_v58  ;;  %v4512_v7 = vpop.f32.mrf.mxu0 }
 0x3b6   : > { %v1737_v15 = vsel %vm1667_vm3, %v4512_v7, -inf }
 0x3b7   : > { %v4514_v8 = vpop.f32.mrf.mxu0 }
 0x3b8   : > { %v1731_v16 = vsel %vm1667_vm3, %v4514_v8, -inf }
 0x3b9   : > { %1735 = vmax.xlane.f32.xlu0 %v1734_v22  ;;  %1732 = vmax.xlane.f32.xlu1 %v1731_v16  ;;  %v4520_v11 = vpop.f32.mrf.mxu0 }
 0x3ba   : > { %v1746_v10 = vsel %vm1667_vm3, %v4520_v11, -inf }
 0x3bb   : > { %v4522_v12 = vpop.f32.mrf.mxu0 }
 0x3bc   : > { %v1740_v17 = vsel %vm1667_vm3, %v4522_v12, -inf }
 0x3bd   : > { %1738 = vmax.xlane.f32.xlu1 %v1737_v15  ;;  %1741 = vmax.xlane.f32.xlu0 %v1740_v17  ;;  %v4528_v18 = vpop.f32.mrf.mxu0 }
 0x3be   : > { %v1749_v26 = vsel %vm1667_vm3, %v4528_v18, -inf }
 0x3bf   : > { %v4530_v23 = vpop.f32.mrf.mxu0 }
 0x3c0   : > { %v1743_v13 = vsel %vm1667_vm3, %v4530_v23, -inf }
 0x3c1   : > { %1747 = vmax.xlane.f32.xlu0 %v1746_v10  ;;  %1744 = vmax.xlane.f32.xlu1 %v1743_v13  ;;  %v4536_v24 = vpop.f32.mrf.mxu0 }
 0x3c2   : > { %v1758_v30 = vsel %vm1667_vm3, %v4536_v24, -inf }
 0x3c3   : > { %v4538_v25 = vpop.f32.mrf.mxu0 }
 0x3c4   : > { %v1752_v27 = vsel %vm1667_vm3, %v4538_v25, -inf }
 0x3c5   : > { %1750 = vmax.xlane.f32.xlu1 %v1749_v26  ;;  %1753 = vmax.xlane.f32.xlu0 %v1752_v27  ;;  %v4544_v28 = vpop.f32.mrf.mxu0 }
 0x3c6   : > { %v1761_v35 = vsel %vm1667_vm3, %v4544_v28, -inf }
 0x3c7   : > { %v4546_v29 = vpop.f32.mrf.mxu0 }
 0x3c8   : > { %v1755_v21 = vsel %vm1667_vm3, %v4546_v29, -inf }
 0x3c9   : > { %1759 = vmax.xlane.f32.xlu0 %v1758_v30  ;;  %1756 = vmax.xlane.f32.xlu1 %v1755_v21 }
 0x3cd   : > { %1762 = vmax.xlane.f32.xlu1 %v1761_v35 }
 0x414   : > { %v1676_v50 = vpop.xlane.xlu1 %1675 }
 0x415   : > { %v1766_v63 = vsub.f32 %v4426_v39, %v1676_v50 }
 0x416   : > { %v1670_v19 = vpop.xlane.xlu0 %1669 }
 0x417   : > { %v1764_v14 = vsub.f32 %v4430_v54, %v1670_v19  ;;  %v1800_v37 = vmul.f32 1.442695, %v1766_v63 }
 0x418   : > { %v1679_v32 = vpop.xlane.xlu1 %1678 }
 0x419   : > { %v1796_v38 = vmul.f32 1.442695, %v1764_v14  ;;  %v1767_v42 = vsub.f32 %v4434_v3, %v1679_v32 }
 0x41a   : > { %v1673_v44 = vpop.xlane.xlu0 %1672 }
 0x41b   : > { %3807 = vpow2.f32 %v1796_v38  ;;  %v1765_v47 = vsub.f32 %v4438_v9, %v1673_v44  ;;  %v1802_v48 = vmul.f32 1.442695, %v1767_v42 }
 0x41c   : > { %3809 = vpow2.f32 %v1800_v37 }
 0x41d   : > { %v1798_v52 = vmul.f32 1.442695, %v1765_v47 }
 0x41e   : > { %v1682_v53 = vpop.xlane.xlu0 %1681 }
 0x41f   : > { %3811 = vpow2.f32 %v1798_v52  ;;  %v1768_v57 = vsub.f32 %v4444_v31, %v1682_v53 }
 0x420   : > { %3813 = vpow2.f32 %v1802_v48 }
 0x421   : > { %v1804_v39 = vmul.f32 1.442695, %v1768_v57 }
 0x422   : > { %v1688_v59 = vpop.xlane.xlu0 %1687  ;;  %v1685_v54 = vpop.xlane.xlu1 %1684 }
 0x423   : > { %3815 = vpow2.f32 %v1804_v39  ;;  %v1770_v61 = vsub.f32 %v4442_v20, %v1688_v59  ;;  %v1769_v3 = vsub.f32 %v4450_v36, %v1685_v54 }
 0x425   : > { %v1808_v43 = vmul.f32 1.442695, %v1770_v61  ;;  %v1806_v1 = vmul.f32 1.442695, %v1769_v3 }
 0x426   : > { %v1691_v2 = vpop.xlane.xlu1 %1690  ;;  %v1694_v9 = vpop.xlane.xlu0 %1693 }
 0x427   : > { %3817 = vpow2.f32 %v1808_v43  ;;  %v1771_v6 = vsub.f32 %v4448_v34, %v1691_v2  ;;  %v1772_v58 = vsub.f32 %v4458_v41, %v1694_v9  ;;  %v1431_v2 = vpop.f32.mrf.mxu1 }
 0x428   : > { %v4563_v22 = vpop.eup %3807  ;;  %3819 = vpow2.f32 %v1806_v1 }
 0x429   : > { %v1810_v31 = vmul.f32 1.442695, %v1771_v6  ;;  %v1812_v16 = vmul.f32 1.442695, %v1772_v58  ;;  %v1860_v15 = vsel %vm1667_vm3, %v4563_v22, 0.0  ;;  %v4567_v20 = vpop.eup %3809 }
 0x42a   : > { %v1700_v36 = vpop.xlane.xlu0 %1699  ;;  %v1697_v17 = vpop.xlane.xlu1 %1696  ;;  %1861 = vadd.xlane.f32.xlu0 %v1860_v15  ;;  %v1866_v27 = vsel %vm1667_vm3, %v4567_v20, 0.0 }
 0x42b   : > { %3821 = vpow2.f32 %v1810_v31  ;;  %v1774_v10 = vsub.f32 %v4456_v40, %v1700_v36  ;;  %v1773_v34 = vsub.f32 %v4466_v46, %v1697_v17  ;;  %v3537_v15 = vpop.f32.mrf.mxu1 }
 0x42c   : > { %v4571_v13 = vpop.eup %3811  ;;  %3823 = vpow2.f32 %v1812_v16 }
 0x42d   : > { %v1816_v41 = vmul.f32 1.442695, %v1774_v10  ;;  %v1814_v26 = vmul.f32 1.442695, %v1773_v34  ;;  %v1863_v30 = vsel %vm1667_vm3, %v4571_v13, 0.0  ;;  %v4577_v21 = vpop.eup %3813 }
 0x42e   : > { %v1703_v35 = vpop.xlane.xlu1 %1702  ;;  %v1706_v50 = vpop.xlane.xlu0 %1705  ;;  %1867 = vadd.xlane.f32.xlu0 %v1866_v27  ;;  %1864 = vadd.xlane.f32.xlu1 %v1863_v30  ;;  %v1869_v37 = vsel %vm1667_vm3, %v4577_v21, 0.0 }
 0x42f   : > { %3825 = vpow2.f32 %v1816_v41  ;;  %v1775_v40 = vsub.f32 %v4464_v45, %v1703_v35  ;;  %v1776_v46 = vsub.f32 %v4474_v51, %v1706_v50 }
 0x430   : > { %v4581_v63 = vpop.eup %3815  ;;  %3827 = vpow2.f32 %v1814_v26  ;;  %v1434_v26 = vpop.f32.mrf.mxu1 }
 0x431   : > { %v1818_v19 = vmul.f32 1.442695, %v1775_v40  ;;  %v1820_v14 = vmul.f32 1.442695, %v1776_v46  ;;  %v1872_v32 = vsel %vm1667_vm3, %v4581_v63, 0.0 }
 0x432   : > { %v1712_v38 = vpop.xlane.xlu0 %1711  ;;  %v1709_v42 = vpop.xlane.xlu1 %1708  ;;  %1873 = vadd.xlane.f32.xlu0 %v1872_v32  ;;  %1870 = vadd.xlane.f32.xlu1 %v1869_v37 }
 0x433   : > { %3829 = vpow2.f32 %v1818_v19  ;;  %v1778_v45 = vsub.f32 %v4472_v49, %v1712_v38  ;;  %v1777_v51 = vsub.f32 %v4482_v56, %v1709_v42  ;;  %v3538_v40 = vpop.f32.mrf.mxu1 }
 0x434   : > { %v4589_v44 = vpop.eup %3817  ;;  %3831 = vpow2.f32 %v1820_v14 }
 0x435   : > { %v4591_v47 = vpop.eup %3819  ;;  %v1824_v48 = vmul.f32 1.442695, %v1778_v45  ;;  %v1822_v52 = vmul.f32 1.442695, %v1777_v51  ;;  %v1878_v53 = vsel %vm1667_vm3, %v4589_v44, 0.0 }
 0x436   : > { %v1715_v57 = vpop.xlane.xlu1 %1714  ;;  %v1718_v39 = vpop.xlane.xlu0 %1717  ;;  %1879 = vadd.xlane.f32.xlu0 %v1878_v53  ;;  %v1875_v59 = vsel %vm1667_vm3, %v4591_v47, 0.0 }
 0x437   : > { %3833 = vpow2.f32 %v1824_v48  ;;  %v1779_v49 = vsub.f32 %v4480_v55, %v1715_v57  ;;  %v1780_v56 = vsub.f32 %v4490_v33, %v1718_v39  ;;  %1876 = vadd.xlane.f32.xlu1 %v1875_v59  ;;  %v3219_v55 = vld [vmem:[%s5055_s11] ss:$0 sm:$0xff] }
 0x438   : > { %v4599_v54 = vpop.eup %3821  ;;  %3835 = vpow2.f32 %v1822_v52  ;;  %v1432_v16 = vadd.f32 %v3219_v55, %v1431_v2 }
 0x439   : > { %v4601_v61 = vpop.eup %3823  ;;  %v1826_v3 = vmul.f32 1.442695, %v1779_v49  ;;  %v1828_v43 = vmul.f32 1.442695, %v1780_v56  ;;  %v1881_v1 = vsel %vm1667_vm3, %v4599_v54, 0.0 }
 0x43a   : > { %v1724_v9 = vpop.xlane.xlu0 %1723  ;;  %v1721_v6 = vpop.xlane.xlu1 %1720  ;;  %v1884_v58 = vsel %vm1667_vm3, %v4601_v61, 0.0  ;;  %v1437_v50 = vmax.f32 %v1432_v16, 0.0 }
 0x43b   : > { %3837 = vpow2.f32 %v1826_v3  ;;  %v1782_v33 = vsub.f32 %v4488_v60, %v1724_v9  ;;  %v1781_v31 = vsub.f32 %v4498_v0, %v1721_v6  ;;  %1885 = vadd.xlane.f32.xlu0 %v1884_v58  ;;  %1882 = vadd.xlane.f32.xlu1 %v1881_v1 }
 0x43c   : > { %v4612_v36 = vpop.eup %3825  ;;  %3839 = vpow2.f32 %v1828_v43  ;;  %v2036_v51 = vpack.c.bf16 %v1437_v50, %v1437_v50 }
 0x43d   : > { %v4614_v17 = vpop.eup %3827  ;;  %v1832_v10 = vmul.f32 1.442695, %v1782_v33  ;;  %v1830_v34 = vmul.f32 1.442695, %v1781_v31  ;;  %v1890_v41 = vsel %vm1667_vm3, %v4612_v36, 0.0 }
 0x43e   : > { %v1727_v27 = vpop.xlane.xlu1 %1726  ;;  %v1730_v30 = vpop.xlane.xlu0 %1729  ;;  %v1887_v60 = vsel %vm1667_vm3, %v4614_v17, 0.0  ;;  %v2087_v3 = vsel %vm2085_vm4, %v2036_v51, 0  ;;  %3718 = vmatprep.subr.msk.bf16.mxu1 %vm2085_vm4, %v2036_v51 }
 0x43f   : > { %3841 = vpow2.f32 %v1832_v10  ;;  %v1783_v0 = vsub.f32 %v4496_v62, %v1727_v27  ;;  %v1784_v35 = vsub.f32 %v4506_v5, %v1730_v30  ;;  %1891 = vadd.xlane.f32.xlu0 %v1890_v41  ;;  %1888 = vadd.xlane.f32.xlu1 %v1887_v60 }
 0x440   : > { %v4622_v46 = vpop.eup %3829  ;;  %3843 = vpow2.f32 %v1830_v34  ;;  %3574 = vmatpush3.bf16.msra.mxu1 %v2087_v3 }
 0x441   : > { %v4624_v19 = vpop.eup %3831  ;;  %v1834_v14 = vmul.f32 1.442695, %v1783_v0  ;;  %v1836_v32 = vmul.f32 1.442695, %v1784_v35  ;;  %v1893_v37 = vsel %vm1667_vm3, %v4622_v46, 0.0 }
 0x442   : > { %v1736_v38 = vpop.xlane.xlu0 %1735  ;;  %v1733_v42 = vpop.xlane.xlu1 %1732  ;;  %v1896_v62 = vsel %vm1667_vm3, %v4624_v19, 0.0 }
 0x443   : > { %3845 = vpow2.f32 %v1834_v14  ;;  %v1786_v5 = vsub.f32 %v4504_v4, %v1736_v38  ;;  %v1785_v45 = vsub.f32 %v4514_v8, %v1733_v42  ;;  %1897 = vadd.xlane.f32.xlu0 %v1896_v62  ;;  %1894 = vadd.xlane.f32.xlu1 %v1893_v37 }
 0x444   : > { %v4632_v48 = vpop.eup %3833  ;;  %3847 = vpow2.f32 %v1836_v32 }
 0x445   : > { %v4634_v52 = vpop.eup %3835  ;;  %v1840_v53 = vmul.f32 1.442695, %v1786_v5  ;;  %v1838_v57 = vmul.f32 1.442695, %v1785_v45  ;;  %v1902_v39 = vsel %vm1667_vm3, %v4632_v48, 0.0 }
 0x446   : > { %v1739_v59 = vpop.xlane.xlu1 %1738  ;;  %v1742_v49 = vpop.xlane.xlu0 %1741  ;;  %v1899_v4 = vsel %vm1667_vm3, %v4634_v52, 0.0 }
 0x447   : > { %3849 = vpow2.f32 %v1840_v53  ;;  %v1787_v8 = vsub.f32 %v4512_v7, %v1739_v59  ;;  %v1788_v56 = vsub.f32 %v4522_v12, %v1742_v49  ;;  %1903 = vadd.xlane.f32.xlu0 %v1902_v39  ;;  %1900 = vadd.xlane.f32.xlu1 %v1899_v4 }
 0x448   : > { %v4642_v43 = vpop.eup %3837  ;;  %3851 = vpow2.f32 %v1838_v57 }
 0x449   : > { %v4644_v1 = vpop.eup %3839  ;;  %v1842_v2 = vmul.f32 1.442695, %v1787_v8  ;;  %v1844_v9 = vmul.f32 1.442695, %v1788_v56  ;;  %v1905_v6 = vsel %vm1667_vm3, %v4642_v43, 0.0 }
 0x44a   : > { %v1748_v58 = vpop.xlane.xlu0 %1747  ;;  %v1745_v55 = vpop.xlane.xlu1 %1744  ;;  %v1908_v7 = vsel %vm1667_vm3, %v4644_v1, 0.0 }
 0x44b   : > { %3853 = vpow2.f32 %v1842_v2  ;;  %v1790_v12 = vsub.f32 %v4520_v11, %v1748_v58  ;;  %v1789_v33 = vsub.f32 %v4530_v23, %v1745_v55  ;;  %1909 = vadd.xlane.f32.xlu0 %v1908_v7  ;;  %1906 = vadd.xlane.f32.xlu1 %v1905_v6 }
 0x44c   : > { %v4652_v31 = vpop.eup %3841  ;;  %3855 = vpow2.f32 %v1844_v9 }
 0x44d   : > { %v4654_v16 = vpop.eup %3843  ;;  %v1848_v15 = vmul.f32 1.442695, %v1790_v12  ;;  %v1846_v10 = vmul.f32 1.442695, %v1789_v33  ;;  %v1914_v34 = vsel %vm1667_vm3, %v4652_v31, 0.0 }
 0x44e   : > { %v1751_v41 = vpop.xlane.xlu1 %1750  ;;  %v1754_v26 = vpop.xlane.xlu0 %1753  ;;  %v1911_v27 = vsel %vm1667_vm3, %v4654_v16, 0.0 }
 0x44f   : > { %3857 = vpow2.f32 %v1848_v15  ;;  %v1791_v11 = vsub.f32 %v4528_v18, %v1751_v41  ;;  %1915 = vadd.xlane.f32.xlu0 %v1914_v34  ;;  %v1792_v23 = vsub.f32 %v4538_v25, %v1754_v26  ;;  %1912 = vadd.xlane.f32.xlu1 %v1911_v27  ;;  %v3802_v15 = vld [vmem:[%s5056_s12] sm:$0xff]  }
 0x450   : > { %v4662_v30 = vpop.eup %3845  ;;  %3859 = vpow2.f32 %v1846_v10  ;;  %3607 = vmatprep.subr.bf16.mxu0 %v3802_v15 }
 0x451   : > { %v4664_v60 = vpop.eup %3847  ;;  %v1850_v0 = vmul.f32 1.442695, %v1791_v11  ;;  %v1852_v35 = vmul.f32 1.442695, %v1792_v23  ;;  %v1917_v50 = vsel %vm1667_vm3, %v4662_v30, 0.0  ;;  %3608 = vmatpush3.bf16.msra.mxu0 %v3802_v15 }
 0x452   : > { %v1920_v40 = vsel %vm1667_vm3, %v4664_v60, 0.0  ;;  %v1760_v14 = vpop.xlane.xlu0 %1759  ;;  %v1757_v32 = vpop.xlane.xlu1 %1756 }
 0x453   : > { %3861 = vpow2.f32 %v1850_v0  ;;  %1921 = vadd.xlane.f32.xlu0 %v1920_v40  ;;  %v1794_v18 = vsub.f32 %v4536_v24, %v1760_v14  ;;  %1918 = vadd.xlane.f32.xlu1 %v1917_v50  ;;  %v1793_v25 = vsub.f32 %v4546_v29, %v1757_v32 }
 0x454   : > { %v4672_v37 = vpop.eup %3849  ;;  %3863 = vpow2.f32 %v1852_v35 }
 0x455   : > { %v4674_v38 = vpop.eup %3851  ;;  %v1856_v42 = vmul.f32 1.442695, %v1794_v18  ;;  %v1854_v62 = vmul.f32 1.442695, %v1793_v25  ;;  %v1926_v5 = vsel %vm1667_vm3, %v4672_v37, 0.0 }
 0x456   : > { %v1923_v45 = vsel %vm1667_vm3, %v4674_v38, 0.0  ;;  %v1763_v51 = vpop.xlane.xlu1 %1762 }
 0x457   : > { %3865 = vpow2.f32 %v1856_v42  ;;  %1927 = vadd.xlane.f32.xlu0 %v1926_v5  ;;  %1924 = vadd.xlane.f32.xlu1 %v1923_v45  ;;  %v1795_v24 = vsub.f32 %v4544_v28, %v1763_v51 }
 0x458   : > { %v4681_v29 = vpop.eup %3853  ;;  %3867 = vpow2.f32 %v1854_v62 }
 0x459   : > { %v4683_v53 = vpop.eup %3855  ;;  %v1858_v57 = vmul.f32 1.442695, %v1795_v24  ;;  %v1929_v39 = vsel %vm1667_vm3, %v4681_v29, 0.0 }
 0x45a   : > { %v1932_v59 = vsel %vm1667_vm3, %v4683_v53, 0.0 }
 0x45b   : > { %3869 = vpow2.f32 %v1858_v57  ;;  %1933 = vadd.xlane.f32.xlu0 %v1932_v59  ;;  %1930 = vadd.xlane.f32.xlu1 %v1929_v39 }
 0x45c   : > { %v4689_v49 = vpop.eup %3857 }
 0x45d   : > { %v4691_v4 = vpop.eup %3859  ;;  %v1938_v28 = vsel %vm1667_vm3, %v4689_v49, 0.0 }
 0x45e   : > { %v1935_v8 = vsel %vm1667_vm3, %v4691_v4, 0.0 }
 0x45f   : > { %1939 = vadd.xlane.f32.xlu0 %v1938_v28  ;;  %1936 = vadd.xlane.f32.xlu1 %v1935_v8 }
 0x460   : > { %v4697_v56 = vpop.eup %3861 }
 0x461   : > { %v4699_v3 = vpop.eup %3863  ;;  %v1941_v2 = vsel %vm1667_vm3, %v4697_v56, 0.0 }
 0x462   : > { %v1944_v9 = vsel %vm1667_vm3, %v4699_v3, 0.0 }
 0x463   : > { %1945 = vadd.xlane.f32.xlu0 %v1944_v9  ;;  %1942 = vadd.xlane.f32.xlu1 %v1941_v2 }
 0x464   : > { %v4705_v6 = vpop.eup %3865 }
 0x465   : > { %v4707_v58 = vpop.eup %3867  ;;  %v1950_v55 = vsel %vm1667_vm3, %v4705_v6, 0.0 }
 0x466   : > { %v1947_v7 = vsel %vm1667_vm3, %v4707_v58, 0.0 }
 0x467   : > { %1951 = vadd.xlane.f32.xlu0 %v1950_v55  ;;  %1948 = vadd.xlane.f32.xlu1 %v1947_v7 }
 0x468   : > { %v4713_v12 = vpop.eup %3869 }
 0x469   : > { %v1953_v33 = vsel %vm1667_vm3, %v4713_v12, 0.0 }
 0x46b   : > { %1954 = vadd.xlane.f32.xlu1 %v1953_v33 }
 0x4b3   : > { %v1862_v10 = vpop.xlane.xlu0 %1861 }
 0x4b4   : > { %3871 = vrcp.f32 %v1862_v10 }
 0x4b7   : > { %v1868_v34 = vpop.xlane.xlu0 %1867  ;;  %v1865_v41 = vpop.xlane.xlu1 %1864 }
 0x4b8   : > { %3873 = vrcp.f32 %v1865_v41 }
 0x4b9   : > { %3875 = vrcp.f32 %v1868_v34 }
 0x4bb   : > { %v1874_v26 = vpop.xlane.xlu0 %1873  ;;  %v1871_v27 = vpop.xlane.xlu1 %1870 }
 0x4bc   : > { %3877 = vrcp.f32 %v1871_v27 }
 0x4bd   : > { %3879 = vrcp.f32 %v1874_v26 }
 0x4bf   : > { %v1880_v11 = vpop.xlane.xlu0 %1879 }
 0x4c0   : > { %v1877_v23 = vpop.xlane.xlu1 %1876 }
 0x4c1   : > { %3881 = vrcp.f32 %v1877_v23  ;;  %v3872_v0 = vpop.eup %3871 }
 0x4c2   : > { %3883 = vrcp.f32 %v1880_v11  ;;  %v1988_v14 = vmul.f32 %v3872_v0, %v4563_v22 }
 0x4c4   : > { %v1886_v35 = vpop.xlane.xlu0 %1885  ;;  %v1883_v50 = vpop.xlane.xlu1 %1882 }
 0x4c5   : > { %v3874_v40 = vpop.eup %3873  ;;  %3885 = vrcp.f32 %v1883_v50 }
 0x4c6   : > { %v1989_v32 = vmul.f32 %v3874_v40, %v4571_v13  ;;  %v3876_v18 = vpop.eup %3875  ;;  %3887 = vrcp.f32 %v1886_v35 }
 0x4c7   : > { %v1990_v45 = vmul.f32 %v3876_v18, %v4567_v20 }
 0x4c8   : > { %v1892_v25 = vpop.xlane.xlu0 %1891  ;;  %v1889_v42 = vpop.xlane.xlu1 %1888  ;;  %v2020_v62 = vpack.c.bf16 %v1989_v32, %v1988_v14 }
 0x4c9   : > { %v3878_v5 = vpop.eup %3877  ;;  %3889 = vrcp.f32 %v1889_v42 }
 0x4ca   : > { %3575 = vmatprep.mubr.msk.bf16.mxu1 %vm1667_vm3, %v2020_v62  ;;  %v1991_v51 = vmul.f32 %v3878_v5, %v4577_v21  ;;  %v3880_v24 = vpop.eup %3879  ;;  %3891 = vrcp.f32 %v1892_v25 }
 0x4cb   : > { %v1992_v13 = vmul.f32 %v3880_v24, %v4581_v63 }
 0x4cc   : > { %v1898_v57 = vpop.xlane.xlu0 %1897  ;;  %v1895_v39 = vpop.xlane.xlu1 %1894  ;;  %v2021_v22 = vpack.c.bf16 %v1991_v51, %v1990_v45 }
 0x4cd   : > { %3893 = vrcp.f32 %v1895_v39 }
 0x4ce   : > { %v3882_v59 = vpop.eup %3881  ;;  %3576 = vmatmul.mubr.msk.bf16.vlgmr.msra.gmra.mxu1 %vm1667_vm3, %v2021_v22  ;;  %3895 = vrcp.f32 %v1898_v57 }
 0x4cf   : > { %v1993_v28 = vmul.f32 %v3882_v59, %v4591_v47  ;;  %v3884_v9 = vpop.eup %3883 }
 0x4d0   : > { %v1904_v8 = vpop.xlane.xlu0 %1903  ;;  %v1901_v2 = vpop.xlane.xlu1 %1900  ;;  %v1994_v33 = vmul.f32 %v3884_v9, %v4589_v44 }
 0x4d1   : > { %v2022_v20 = vpack.c.bf16 %v1993_v28, %v1992_v13  ;;  %3897 = vrcp.f32 %v1901_v2 }
 0x4d2   : > { %v3886_v21 = vpop.eup %3885  ;;  %3899 = vrcp.f32 %v1904_v8 }
 0x4d3   : > { %3579 = vmatprep.mubr.msk.bf16.mxu1 %vm1667_vm3, %v2022_v20  ;;  %v1995_v15 = vmul.f32 %v3886_v21, %v4599_v54  ;;  %v3888_v10 = vpop.eup %3887 }
 0x4d4   : > { %v1910_v55 = vpop.xlane.xlu0 %1909  ;;  %v1907_v7 = vpop.xlane.xlu1 %1906  ;;  %v1996_v26 = vmul.f32 %v3888_v10, %v4601_v61 }
 0x4d5   : > { %3901 = vrcp.f32 %v1907_v7  ;;  %v2023_v63 = vpack.c.bf16 %v1995_v15, %v1994_v33 }
 0x4d6   : > { %v3890_v47 = vpop.eup %3889  ;;  %3903 = vrcp.f32 %v1910_v55 }
 0x4d7   : > { %3580 = vmatmul.mubr.msk.bf16.gmra.mxu1 %vm1667_vm3, %v2023_v63  ;;  %v1997_v27 = vmul.f32 %v3890_v47, %v4614_v17  ;;  %v3892_v11 = vpop.eup %3891 }
 0x4d8   : > { %v1916_v34 = vpop.xlane.xlu0 %1915  ;;  %v1913_v41 = vpop.xlane.xlu1 %1912  ;;  %v1998_v35 = vmul.f32 %v3892_v11, %v4612_v36 }
 0x4d9   : > { %3905 = vrcp.f32 %v1913_v41  ;;  %v2024_v23 = vpack.c.bf16 %v1997_v27, %v1996_v26 }
 0x4da   : > { %v3894_v0 = vpop.eup %3893  ;;  %3907 = vrcp.f32 %v1916_v34 }
 0x4db   : > { %3583 = vmatprep.mubr.msk.bf16.mxu1 %vm1667_vm3, %v2024_v23  ;;  %v1999_v50 = vmul.f32 %v3894_v0, %v4622_v46  ;;  %v3896_v40 = vpop.eup %3895 }
 0x4dc   : > { %v1922_v44 = vpop.xlane.xlu0 %1921  ;;  %v1919_v54 = vpop.xlane.xlu1 %1918  ;;  %v2000_v18 = vmul.f32 %v3896_v40, %v4624_v19 }
 0x4dd   : > { %3909 = vrcp.f32 %v1919_v54  ;;  %v2025_v14 = vpack.c.bf16 %v1999_v50, %v1998_v35 }
 0x4de   : > { %v3898_v32 = vpop.eup %3897  ;;  %3911 = vrcp.f32 %v1922_v44 }
 0x4df   : > { %3584 = vmatmul.mubr.msk.bf16.gmra.mxu1 %vm1667_vm3, %v2025_v14  ;;  %v2001_v25 = vmul.f32 %v3898_v32, %v4634_v52  ;;  %v3900_v42 = vpop.eup %3899  ;;  %v3935_v32 = vld [vmem:[%s4196_s18] sm:$0xff]  }
 0x4e0   : > { %v1928_v61 = vpop.xlane.xlu0 %1927  ;;  %v1925_v17 = vpop.xlane.xlu1 %1924  ;;  %v2002_v45 = vmul.f32 %v3900_v42, %v4632_v48  ;;  %v3941_v42 = vld [vmem:[%s4196_s18 + $0x30] sm:$0xff]  }
 0x4e1   : > { %3913 = vrcp.f32 %v1925_v17  ;;  %v2026_v62 = vpack.c.bf16 %v2001_v25, %v2000_v18  ;;  %v3938_v17 = vld [vmem:[%s4196_s18 + $0x18] sm:$0xff]   ;;  %v3939_v18 = vld [vmem:[%s4196_s18 + $0x20] sm:$0xff]   ;;  %v3940_v25 = vld [vmem:[%s4196_s18 + $0x28] sm:$0xff]  }
 0x4e2   : > { %v3902_v5 = vpop.eup %3901  ;;  %3915 = vrcp.f32 %v1928_v61  ;;  %v3937_v61 = vld [vmem:[%s4196_s18 + $0x10] sm:$0xff]  }
 0x4e3   : > { %3587 = vmatprep.mubr.msk.bf16.mxu1 %vm1667_vm3, %v2026_v62  ;;  %v2003_v51 = vmul.f32 %v3902_v5, %v4642_v43  ;;  %v3904_v24 = vpop.eup %3903  ;;  %v3942_v62 = vld [vmem:[%s4196_s18 + $0x38] sm:$0xff]   ;;  %v3943_v5 = vld [vmem:[%s4196_s18 + $0x40] sm:$0xff]  }
 0x4e4   : > { %v1934_v36 = vpop.xlane.xlu0 %1933  ;;  %v1931_v46 = vpop.xlane.xlu1 %1930  ;;  %v2004_v22 = vmul.f32 %v3904_v24, %v4644_v1  ;;  %v3948_v24 = vld [vmem:[%s4196_s18 + $0x68] sm:$0xff]  }
 0x4e5   : > { %3917 = vrcp.f32 %v1931_v46  ;;  %v2027_v57 = vpack.c.bf16 %v2003_v51, %v2002_v45  ;;  %v3945_v46 = vld [vmem:[%s4196_s18 + $0x50] sm:$0xff]   ;;  %v3946_v45 = vld [vmem:[%s4196_s18 + $0x58] sm:$0xff]   ;;  %v3947_v51 = vld [vmem:[%s4196_s18 + $0x60] sm:$0xff]  }
 0x4e6   : > { %v3906_v39 = vpop.eup %3905  ;;  %3919 = vrcp.f32 %v1934_v36  ;;  %v3944_v36 = vld [vmem:[%s4196_s18 + $0x48] sm:$0xff]  }
 0x4e7   : > { %3588 = vmatmul.mubr.msk.bf16.gmra.mxu1 %vm1667_vm3, %v2027_v57  ;;  %v2005_v59 = vmul.f32 %v3906_v39, %v4654_v16  ;;  %v3908_v13 = vpop.eup %3907  ;;  %v3949_v57 = vld [vmem:[%s4196_s18 + $0x70] sm:$0xff]  }
 0x4e8   : > { %v1940_v19 = vpop.xlane.xlu0 %1939  ;;  %v1937_v52 = vpop.xlane.xlu1 %1936  ;;  %v2006_v2 = vmul.f32 %v3908_v13, %v4652_v31 }
 0x4e9   : > { %3921 = vrcp.f32 %v1937_v52  ;;  %v2028_v28 = vpack.c.bf16 %v2005_v59, %v2004_v22  ;;  %v3950_v22 = vld [vmem:[%s4196_s18 + $0x78] sm:$0xff]  }
 0x4ea   : > { %v3910_v8 = vpop.eup %3909  ;;  %3923 = vrcp.f32 %v1940_v19 }
 0x4eb   : > { %3591 = vmatprep.mubr.msk.bf16.mxu1 %vm1667_vm3, %v2028_v28  ;;  %v2007_v9 = vmul.f32 %v3910_v8, %v4662_v30  ;;  %v3912_v20 = vpop.eup %3911  ;;  %v3806_v8 = vld [vmem:[%s5058_s14] sm:$0xff]  }
 0x4ec   : > { %v1946_v48 = vpop.xlane.xlu0 %1945  ;;  %v1943_v43 = vpop.xlane.xlu1 %1942  ;;  %v2008_v7 = vmul.f32 %v3912_v20, %v4664_v60 }
 0x4ed   : > { %3925 = vrcp.f32 %v1943_v43  ;;  %v2029_v21 = vpack.c.bf16 %v2007_v9, %v2006_v2 }
 0x4ee   : > { %v3914_v55 = vpop.eup %3913  ;;  %3927 = vrcp.f32 %v1946_v48 }
 0x4ef   : > { %3592 = vmatmul.mubr.msk.bf16.gmra.mxu1 %vm1667_vm3, %v2029_v21  ;;  %v2009_v33 = vmul.f32 %v3914_v55, %v4674_v38  ;;  %v3916_v15 = vpop.eup %3915 }
 0x4f0   : > { %v1952_v1 = vpop.xlane.xlu0 %1951  ;;  %v1949_v16 = vpop.xlane.xlu1 %1948  ;;  %v2010_v30 = vmul.f32 %v3916_v15, %v4672_v37 }
 0x4f1   : > { %3929 = vrcp.f32 %v1949_v16  ;;  %v2030_v10 = vpack.c.bf16 %v2009_v33, %v2008_v7 }
 0x4f2   : > { %v3918_v63 = vpop.eup %3917  ;;  %3931 = vrcp.f32 %v1952_v1 }
 0x4f3   : > { %3595 = vmatprep.mubr.msk.bf16.mxu1 %vm1667_vm3, %v2030_v10  ;;  %v2011_v47 = vmul.f32 %v3918_v63, %v4681_v29  ;;  %v3920_v34 = vpop.eup %3919 }
 0x4f4   : > { %v1955_v31 = vpop.xlane.xlu1 %1954  ;;  %v2012_v60 = vmul.f32 %v3920_v34, %v4683_v53 }
 0x4f5   : > { %3933 = vrcp.f32 %v1955_v31  ;;  %v2031_v41 = vpack.c.bf16 %v2011_v47, %v2010_v30 }
 0x4f6   : > { %v3922_v26 = vpop.eup %3921 }
 0x4f7   : > { %3596 = vmatmul.mubr.msk.bf16.gmra.mxu1 %vm1667_vm3, %v2031_v41  ;;  %v2013_v38 = vmul.f32 %v3922_v26, %v4691_v4  ;;  %v3924_v27 = vpop.eup %3923 }
 0x4f8   : > { %v2014_v0 = vmul.f32 %v3924_v27, %v4689_v49 }
 0x4f9   : > { %v2032_v11 = vpack.c.bf16 %v2013_v38, %v2012_v60 }
 0x4fa   : > { %v3926_v23 = vpop.eup %3925 }
 0x4fb   : > { %3599 = vmatprep.mubr.msk.bf16.mxu1 %vm1667_vm3, %v2032_v11  ;;  %v2015_v37 = vmul.f32 %v3926_v23, %v4697_v56  ;;  %v3928_v29 = vpop.eup %3927 }
 0x4fc   : > { %v2016_v53 = vmul.f32 %v3928_v29, %v4699_v3  ;;  %v3803_v3 = vld [vmem:[%s5059_s15 + $0x8] sm:$0xff]  }
 0x4fd   : > { %v2033_v44 = vpack.c.bf16 %v2015_v37, %v2014_v0  ;;  %3641 = vmatprep.subr.bf16.mxu1 %v3803_v3 }
 0x4fe   : > { %v3930_v54 = vpop.eup %3929  ;;  %3642 = vmatpush3.bf16.msra.mxu1 %v3803_v3 }
 0x4ff   : > { %v3932_v35 = vpop.eup %3931  ;;  %3600 = vmatmul.mubr.msk.bf16.gmra.mxu1 %vm1667_vm3, %v2033_v44  ;;  %v2017_v4 = vmul.f32 %v3930_v54, %v4707_v58  ;;  %v3805_v58 = vld [vmem:[%s5059_s15] sm:$0xff]  }
 0x500   : > { %v2018_v14 = vmul.f32 %v3932_v35, %v4705_v6  ;;  %v3804_v6 = vld [vmem:[%s5058_s14 + $0x8] sm:$0xff]   ;;  %3643 = vmatprep.subr.bf16.mxu1 %v3805_v58 }
 0x501   : > { %v2034_v40 = vpack.c.bf16 %v2017_v4, %v2016_v53  ;;  %3677 = vmatprep.subr.bf16.mxu0 %v3804_v6 }
 0x502   : > { %v3934_v50 = vpop.eup %3933  ;;  %3644 = vmatpush3.bf16.msra.mxu1 %v3805_v58 }
 0x503   : > { %v2019_v49 = vmul.f32 %v3934_v50, %v4713_v12  ;;  %3603 = vmatprep.mubr.msk.bf16.mxu1 %vm1667_vm3, %v2034_v40  ;;  %v3936_v12 = vld [vmem:[%s4196_s18 + $0x8] sm:$0xff]  }
 0x505   : > { %v2035_v56 = vpack.c.bf16 %v2019_v49, %v2018_v14 }
 0x507   : > { %3604 = vmatmul.mubr.msk.bf16.gmra.mxu1 %vm1667_vm3, %v2035_v56 }
 0x508   : > { %3645 = vmatprep.mubr.msk.bf16.mxu1 %vm732_vm0, %v3935_v32 }
 0x50f   : > { %3646 = vmatmul.mubr.msk.bf16.vlgmr.msra.gmra.mxu1 %vm732_vm0, %v3936_v12 }
 0x510   : > { %3649 = vmatprep.mubr.msk.bf16.mxu1 %vm732_vm0, %v3937_v61 }
 0x517   : > { %3650 = vmatmul.mubr.msk.bf16.gmra.mxu1 %vm732_vm0, %v3938_v17  ;;  %v4831_v17 = vld [vmem:[%s5057_s13] ss:$0 sm:$0xff] }
 0x518   : > { %3653 = vmatprep.mubr.msk.bf16.mxu1 %vm732_vm0, %v3939_v18 }
 0x51f   : > { %3654 = vmatmul.mubr.msk.bf16.gmra.mxu1 %vm732_vm0, %v3940_v25 }
 0x520   : > { %3657 = vmatprep.mubr.msk.bf16.mxu1 %vm732_vm0, %v3941_v42 }
 0x527   : > { %3658 = vmatmul.mubr.msk.bf16.gmra.mxu1 %vm732_vm0, %v3942_v62 }
 0x528   : > { %3661 = vmatprep.mubr.msk.bf16.mxu1 %vm732_vm0, %v3943_v5 }
 0x52f   : > { %3662 = vmatmul.mubr.msk.bf16.gmra.mxu1 %vm732_vm0, %v3944_v36 }
 0x530   : > { %3665 = vmatprep.mubr.msk.bf16.mxu1 %vm732_vm0, %v3945_v46 }
 0x537   : > { %3666 = vmatmul.mubr.msk.bf16.gmra.mxu1 %vm732_vm0, %v3946_v45 }
 0x538   : > { %3669 = vmatprep.mubr.msk.bf16.mxu1 %vm732_vm0, %v3947_v51 }
 0x53f   : > { %3670 = vmatmul.mubr.msk.bf16.gmra.mxu1 %vm732_vm0, %v3948_v24 }
 0x540   : > { %3673 = vmatprep.mubr.msk.bf16.mxu1 %vm732_vm0, %v3949_v57 }
 0x547   : > { %3674 = vmatmul.mubr.msk.bf16.gmra.mxu1 %vm732_vm0, %v3950_v22 }
 0x58e   : > { %v3577_v39 = vpop.f32.mrf.mxu1 }
 0x590   : > { %v2123_v19 = vpop.f32.mrf.mxu1 }
 0x592   : > { %v3578_v52 = vpop.f32.mrf.mxu1 }
 0x593   : > { %v2251_v28 = vpack.c.bf16 %v3578_v52, %v3577_v39 }
 0x594   : > { %v2126_v59 = vpop.f32.mrf.mxu1 }
 0x595   : > { %v2250_v13 = vpack.c.bf16 %v2126_v59, %v2123_v19 }
 0x597   : > { %v3581_v48 = vpop.f32.mrf.mxu1  ;;  %3609 = vmatprep.mubr.msk.bf16.mxu0 %vm1005_vm2, %v2250_v13 }
 0x598   : > { %3610 = vmatmul.mubr.msk.bf16.vlgmr.msra.gmra.mxu0 %vm1005_vm2, %v2251_v28 }
 0x599   : > { %v2139_v43 = vpop.f32.mrf.mxu1  ;;  %3678 = vmatpush3.bf16.msra.mxu0 %v3804_v6 }
 0x59a   : > { %3679 = vmatprep.subr.bf16.mxu0 %v3806_v8 }
 0x59b   : > { %v3582_v2 = vpop.f32.mrf.mxu1 }
 0x59c   : > { %v2253_v21 = vpack.c.bf16 %v3582_v2, %v3581_v48 }
 0x59d   : > { %v2142_v9 = vpop.f32.mrf.mxu1  ;;  %3680 = vmatpush3.bf16.msra.mxu0 %v3806_v8 }
 0x59e   : > { %v2252_v20 = vpack.c.bf16 %v2142_v9, %v2139_v43 }
 0x59f   : > { %v3585_v55 = vpop.f32.mrf.mxu1 }
 0x5a0   : > { %3613 = vmatprep.mubr.msk.bf16.mxu0 %vm1005_vm2, %v2252_v20 }
 0x5a1   : > { %v2155_v1 = vpop.f32.mrf.mxu1  ;;  %3614 = vmatmul.mubr.msk.bf16.gmra.mxu0 %vm1005_vm2, %v2253_v21 }
 0x5a3   : > { %v3586_v16 = vpop.f32.mrf.mxu1 }
 0x5a4   : > { %v2255_v15 = vpack.c.bf16 %v3586_v16, %v3585_v55 }
 0x5a5   : > { %v2158_v7 = vpop.f32.mrf.mxu1 }
 0x5a6   : > { %v2254_v33 = vpack.c.bf16 %v2158_v7, %v2155_v1 }
 0x5a7   : > { %v3589_v10 = vpop.f32.mrf.mxu1 }
 0x5a8   : > { %3617 = vmatprep.mubr.msk.bf16.mxu0 %vm1005_vm2, %v2254_v33 }
 0x5a9   : > { %v2171_v63 = vpop.f32.mrf.mxu1  ;;  %3618 = vmatmul.mubr.msk.bf16.gmra.mxu0 %vm1005_vm2, %v2255_v15 }
 0x5ab   : > { %v3590_v31 = vpop.f32.mrf.mxu1 }
 0x5ac   : > { %v2257_v34 = vpack.c.bf16 %v3590_v31, %v3589_v10 }
 0x5ad   : > { %v2174_v30 = vpop.f32.mrf.mxu1 }
 0x5ae   : > { %v2256_v47 = vpack.c.bf16 %v2174_v30, %v2171_v63 }
 0x5af   : > { %v3593_v41 = vpop.f32.mrf.mxu1 }
 0x5b0   : > { %3621 = vmatprep.mubr.msk.bf16.mxu0 %vm1005_vm2, %v2256_v47 }
 0x5b1   : > { %v2187_v26 = vpop.f32.mrf.mxu1  ;;  %3622 = vmatmul.mubr.msk.bf16.gmra.mxu0 %vm1005_vm2, %v2257_v34 }
 0x5b3   : > { %v3594_v60 = vpop.f32.mrf.mxu1 }
 0x5b4   : > { %v2259_v11 = vpack.c.bf16 %v3594_v60, %v3593_v41 }
 0x5b5   : > { %v2190_v38 = vpop.f32.mrf.mxu1 }
 0x5b6   : > { %v2258_v27 = vpack.c.bf16 %v2190_v38, %v2187_v26 }
 0x5b7   : > { %v3597_v23 = vpop.f32.mrf.mxu1 }
 0x5b8   : > { %3625 = vmatprep.mubr.msk.bf16.mxu0 %vm1005_vm2, %v2258_v27 }
 0x5b9   : > { %v2203_v0 = vpop.f32.mrf.mxu1  ;;  %3626 = vmatmul.mubr.msk.bf16.gmra.mxu0 %vm1005_vm2, %v2259_v11 }
 0x5bb   : > { %v3598_v37 = vpop.f32.mrf.mxu1 }
 0x5bc   : > { %v2261_v54 = vpack.c.bf16 %v3598_v37, %v3597_v23 }
 0x5bd   : > { %v2206_v29 = vpop.f32.mrf.mxu1 }
 0x5be   : > { %v2260_v44 = vpack.c.bf16 %v2206_v29, %v2203_v0 }
 0x5bf   : > { %v3601_v35 = vpop.f32.mrf.mxu1 }
 0x5c0   : > { %3629 = vmatprep.mubr.msk.bf16.mxu0 %vm1005_vm2, %v2260_v44 }
 0x5c1   : > { %v2219_v53 = vpop.f32.mrf.mxu1  ;;  %3630 = vmatmul.mubr.msk.bf16.gmra.mxu0 %vm1005_vm2, %v2261_v54 }
 0x5c3   : > { %v3602_v4 = vpop.f32.mrf.mxu1 }
 0x5c4   : > { %v2263_v14 = vpack.c.bf16 %v3602_v4, %v3601_v35 }
 0x5c5   : > { %v2222_v50 = vpop.f32.mrf.mxu1 }
 0x5c6   : > { %v2262_v40 = vpack.c.bf16 %v2222_v50, %v2219_v53 }
 0x5c7   : > { %v3605_v49 = vpop.f32.mrf.mxu1 }
 0x5c8   : > { %3633 = vmatprep.mubr.msk.bf16.mxu0 %vm1005_vm2, %v2262_v40 }
 0x5c9   : > { %v2235_v56 = vpop.f32.mrf.mxu1  ;;  %3634 = vmatmul.mubr.msk.bf16.gmra.mxu0 %vm1005_vm2, %v2263_v14 }
 0x5cb   : > { %v3606_v32 = vpop.f32.mrf.mxu1 }
 0x5cc   : > { %v2265_v58 = vpack.c.bf16 %v3606_v32, %v3605_v49 }
 0x5cd   : > { %v2238_v3 = vpop.f32.mrf.mxu1 }
 0x5ce   : > { %v2264_v6 = vpack.c.bf16 %v2238_v3, %v2235_v56 }
 0x5d0   : > { %3637 = vmatprep.mubr.msk.bf16.mxu0 %vm1005_vm2, %v2264_v6 }
 0x5d1   : > { %3638 = vmatmul.mubr.msk.bf16.gmra.mxu0 %vm1005_vm2, %v2265_v58 }
 0x658   : > { %v3611_v12 = vpop.f32.mrf.mxu0 }
 0x659   : > { %v2372_v62 = vadd.f32 %v3611_v12, %v4831_v17 }
 0x65a   : > { %v2363_v61 = vpop.f32.mrf.mxu0 }
 0x65b   : > { %v2364_v25 = vadd.f32 %v4831_v17, %v2363_v61  ;;  %v2492_v57 = vmax.f32 %v2372_v62, 0.0 }
 0x65c   : > { %v3612_v18 = vpop.f32.mrf.mxu0 }
 0x65d   : > { %v2375_v42 = vadd.f32 %v3612_v18, %v4831_v17  ;;  %v2490_v45 = vmax.f32 %v2364_v25, 0.0 }
 0x65e   : > { %v2366_v5 = vpop.f32.mrf.mxu0 }
 0x65f   : > { %v2367_v36 = vadd.f32 %v4831_v17, %v2366_v5  ;;  %v2493_v46 = vmax.f32 %v2375_v42, 0.0 }
 0x661   : > { %v2491_v51 = vmax.f32 %v2367_v36, 0.0  ;;  %v3615_v24 = vpop.f32.mrf.mxu0  ;;  %v2523_v52 = vpack.c.bf16 %v2493_v46, %v2492_v57 }
 0x662   : > { %v2388_v28 = vadd.f32 %v3615_v24, %v4831_v17 }
 0x663   : > { %v2522_v39 = vpack.c.bf16 %v2491_v51, %v2490_v45  ;;  %v2379_v19 = vpop.f32.mrf.mxu0 }
 0x664   : > { %v2380_v59 = vadd.f32 %v4831_v17, %v2379_v19  ;;  %v2496_v21 = vmax.f32 %v2388_v28, 0.0 }
 0x665   : > { %v3616_v22 = vpop.f32.mrf.mxu0  ;;  %3681 = vmatprep.mubr.msk.bf16.mxu0 %vm732_vm0, %v2522_v39 }
 0x666   : > { %v2391_v13 = vadd.f32 %v3616_v22, %v4831_v17  ;;  %3682 = vmatmul.mubr.msk.bf16.vlgmr.msra.gmra.mxu0 %vm732_vm0, %v2523_v52  ;;  %v2494_v9 = vmax.f32 %v2380_v59, 0.0 }
 0x667   : > { %v2382_v8 = vpop.f32.mrf.mxu0 }
 0x668   : > { %v2383_v48 = vadd.f32 %v4831_v17, %v2382_v8  ;;  %v2497_v43 = vmax.f32 %v2391_v13, 0.0 }
 0x669   : > { %v3619_v2 = vpop.f32.mrf.mxu0 }
 0x66a   : > { %v2495_v20 = vmax.f32 %v2383_v48, 0.0  ;;  %v2525_v16 = vpack.c.bf16 %v2497_v43, %v2496_v21  ;;  %v2404_v10 = vadd.f32 %v3619_v2, %v4831_v17 }
 0x66b   : > { %v2395_v55 = vpop.f32.mrf.mxu0 }
 0x66c   : > { %v2524_v1 = vpack.c.bf16 %v2495_v20, %v2494_v9  ;;  %v2396_v33 = vadd.f32 %v4831_v17, %v2395_v55  ;;  %v2500_v26 = vmax.f32 %v2404_v10, 0.0 }
 0x66d   : > { %v3620_v7 = vpop.f32.mrf.mxu0 }
 0x66e   : > { %v2407_v15 = vadd.f32 %v3620_v7, %v4831_v17  ;;  %3685 = vmatprep.mubr.msk.bf16.mxu0 %vm732_vm0, %v2524_v1  ;;  %v2498_v34 = vmax.f32 %v2396_v33, 0.0 }
 0x66f   : > { %v2398_v63 = vpop.f32.mrf.mxu0  ;;  %3686 = vmatmul.mubr.msk.bf16.gmra.mxu0 %vm732_vm0, %v2525_v16 }
 0x670   : > { %v2399_v31 = vadd.f32 %v4831_v17, %v2398_v63  ;;  %v2501_v30 = vmax.f32 %v2407_v15, 0.0 }
 0x671   : > { %v3623_v47 = vpop.f32.mrf.mxu0 }
 0x672   : > { %v2499_v41 = vmax.f32 %v2399_v31, 0.0  ;;  %v2527_v27 = vpack.c.bf16 %v2501_v30, %v2500_v26  ;;  %v2420_v37 = vadd.f32 %v3623_v47, %v4831_v17 }
 0x673   : > { %v2411_v60 = vpop.f32.mrf.mxu0 }
 0x674   : > { %v2526_v38 = vpack.c.bf16 %v2499_v41, %v2498_v34  ;;  %v2412_v23 = vadd.f32 %v4831_v17, %v2411_v60  ;;  %v2504_v50 = vmax.f32 %v2420_v37, 0.0 }
 0x675   : > { %v3624_v11 = vpop.f32.mrf.mxu0 }
 0x676   : > { %v2423_v0 = vadd.f32 %v3624_v11, %v4831_v17  ;;  %3689 = vmatprep.mubr.msk.bf16.mxu0 %vm732_vm0, %v2526_v38  ;;  %v2502_v53 = vmax.f32 %v2412_v23, 0.0 }
 0x677   : > { %v2414_v29 = vpop.f32.mrf.mxu0  ;;  %3690 = vmatmul.mubr.msk.bf16.gmra.mxu0 %vm732_vm0, %v2527_v27 }
 0x678   : > { %v2415_v44 = vadd.f32 %v4831_v17, %v2414_v29  ;;  %v2505_v54 = vmax.f32 %v2423_v0, 0.0 }
 0x679   : > { %v3627_v35 = vpop.f32.mrf.mxu0 }
 0x67a   : > { %v2503_v4 = vmax.f32 %v2415_v44, 0.0  ;;  %v2529_v49 = vpack.c.bf16 %v2505_v54, %v2504_v50  ;;  %v2436_v6 = vadd.f32 %v3627_v35, %v4831_v17  ;;  %v3647_v44 = vpop.f32.mrf.mxu1 }
 0x67b   : > { %v2427_v40 = vpop.f32.mrf.mxu0 }
 0x67c   : > { %v2528_v14 = vpack.c.bf16 %v2503_v4, %v2502_v53  ;;  %v2428_v32 = vadd.f32 %v4831_v17, %v2427_v40  ;;  %v2508_v62 = vmax.f32 %v2436_v6, 0.0  ;;  %v2592_v54 = vpop.f32.mrf.mxu1 }
 0x67d   : > { %v3628_v56 = vpop.f32.mrf.mxu0 }
 0x67e   : > { %v2439_v3 = vadd.f32 %v3628_v56, %v4831_v17  ;;  %3693 = vmatprep.mubr.msk.bf16.mxu0 %vm732_vm0, %v2528_v14  ;;  %v2506_v25 = vmax.f32 %v2428_v32, 0.0  ;;  %v3648_v35 = vpop.f32.mrf.mxu1 }
 0x67f   : > { %v2430_v58 = vpop.f32.mrf.mxu0  ;;  %3694 = vmatmul.mubr.msk.bf16.gmra.mxu0 %vm732_vm0, %v2529_v49 }
 0x680   : > { %v2431_v12 = vadd.f32 %v4831_v17, %v2430_v58  ;;  %v2509_v61 = vmax.f32 %v2439_v3, 0.0  ;;  %v2595_v53 = vpop.f32.mrf.mxu1 }
 0x681   : > { %v3631_v18 = vpop.f32.mrf.mxu0 }
 0x682   : > { %v2507_v42 = vmax.f32 %v2431_v12, 0.0  ;;  %v2531_v46 = vpack.c.bf16 %v2509_v61, %v2508_v62  ;;  %v2452_v57 = vadd.f32 %v3631_v18, %v4831_v17  ;;  %v3651_v4 = vpop.f32.mrf.mxu1  ;;  %v4897_v18 = vld [vmem:[%s5060_s16] ss:$0 sm:$0xff] }
 0x683   : > { %v2443_v5 = vpop.f32.mrf.mxu0 }
 0x684   : > { %v2530_v36 = vpack.c.bf16 %v2507_v42, %v2506_v25  ;;  %v2444_v51 = vadd.f32 %v4831_v17, %v2443_v5  ;;  %v2512_v28 = vmax.f32 %v2452_v57, 0.0  ;;  %v2608_v50 = vpop.f32.mrf.mxu1 }
 0x685   : > { %v3632_v45 = vpop.f32.mrf.mxu0 }
 0x686   : > { %v2455_v24 = vadd.f32 %v3632_v45, %v4831_v17  ;;  %3697 = vmatprep.mubr.msk.bf16.mxu0 %vm732_vm0, %v2530_v36  ;;  %v2510_v59 = vmax.f32 %v2444_v51, 0.0  ;;  %v3652_v40 = vpop.f32.mrf.mxu1 }
 0x687   : > { %v2446_v39 = vpop.f32.mrf.mxu0  ;;  %3698 = vmatmul.mubr.msk.bf16.gmra.mxu0 %vm732_vm0, %v2531_v46 }
 0x688   : > { %v2447_v19 = vadd.f32 %v4831_v17, %v2446_v39  ;;  %v2513_v52 = vmax.f32 %v2455_v24, 0.0 }
 0x689   : > { %v3635_v22 = vpop.f32.mrf.mxu0 }
 0x68a   : > { %v2511_v13 = vmax.f32 %v2447_v19, 0.0  ;;  %v2533_v43 = vpack.c.bf16 %v2513_v52, %v2512_v28  ;;  %v2468_v21 = vadd.f32 %v3635_v22, %v4831_v17 }
 0x68b   : > { %v2459_v8 = vpop.f32.mrf.mxu0 }
 0x68c   : > { %v2532_v48 = vpack.c.bf16 %v2511_v13, %v2510_v59  ;;  %v2460_v9 = vadd.f32 %v4831_v17, %v2459_v8  ;;  %v2516_v10 = vmax.f32 %v2468_v21, 0.0 }
 0x68d   : > { %v3636_v2 = vpop.f32.mrf.mxu0 }
 0x68e   : > { %v2471_v20 = vadd.f32 %v3636_v2, %v4831_v17  ;;  %3701 = vmatprep.mubr.msk.bf16.mxu0 %vm732_vm0, %v2532_v48  ;;  %v2514_v33 = vmax.f32 %v2460_v9, 0.0 }
 0x68f   : > { %v2462_v55 = vpop.f32.mrf.mxu0  ;;  %3702 = vmatmul.mubr.msk.bf16.gmra.mxu0 %vm732_vm0, %v2533_v43 }
 0x690   : > { %v2463_v1 = vadd.f32 %v4831_v17, %v2462_v55  ;;  %v2517_v16 = vmax.f32 %v2471_v20, 0.0 }
 0x691   : > { %v3639_v7 = vpop.f32.mrf.mxu0 }
 0x692   : > { %v2515_v15 = vmax.f32 %v2463_v1, 0.0  ;;  %v2535_v30 = vpack.c.bf16 %v2517_v16, %v2516_v10  ;;  %v2484_v26 = vadd.f32 %v3639_v7, %v4831_v17 }
 0x693   : > { %v2475_v63 = vpop.f32.mrf.mxu0 }
 0x694   : > { %v2534_v31 = vpack.c.bf16 %v2515_v15, %v2514_v33  ;;  %v2476_v34 = vadd.f32 %v4831_v17, %v2475_v63  ;;  %v2520_v0 = vmax.f32 %v2484_v26, 0.0 }
 0x695   : > { %v3640_v47 = vpop.f32.mrf.mxu0 }
 0x696   : > { %v2487_v41 = vadd.f32 %v3640_v47, %v4831_v17  ;;  %3705 = vmatprep.mubr.msk.bf16.mxu0 %vm732_vm0, %v2534_v31  ;;  %v2518_v11 = vmax.f32 %v2476_v34, 0.0 }
 0x697   : > { %v2478_v60 = vpop.f32.mrf.mxu0  ;;  %3706 = vmatmul.mubr.msk.bf16.gmra.mxu0 %vm732_vm0, %v2535_v30 }
 0x698   : > { %v2479_v38 = vadd.f32 %v4831_v17, %v2478_v60  ;;  %v2521_v27 = vmax.f32 %v2487_v41, 0.0  ;;  %v2611_v17 = vpop.f32.mrf.mxu1 }
 0x69a   : > { %v2519_v23 = vmax.f32 %v2479_v38, 0.0  ;;  %v2537_v29 = vpack.c.bf16 %v2521_v27, %v2520_v0  ;;  %v3655_v14 = vpop.f32.mrf.mxu1 }
 0x69c   : > { %v2536_v37 = vpack.c.bf16 %v2519_v23, %v2518_v11  ;;  %v2624_v49 = vpop.f32.mrf.mxu1 }
 0x69e   : > { %3709 = vmatprep.mubr.msk.bf16.mxu0 %vm732_vm0, %v2536_v37  ;;  %v4881_v56 = vpop.f32.mrf.mxu1 }
 0x69f   : > { %3710 = vmatmul.mubr.msk.bf16.gmra.mxu0 %vm732_vm0, %v2537_v29 }
 0x6a0   : > { %v4883_v32 = vpop.f32.mrf.mxu1 }
 0x6a2   : > { %v4885_v3 = vpop.f32.mrf.mxu1 }
 0x6a4   : > { %v4887_v6 = vpop.f32.mrf.mxu1 }
 0x6a6   : > { %v4889_v58 = vpop.f32.mrf.mxu1 }
 0x6a8   : > { %v4892_v12 = vpop.f32.mrf.mxu1 }
 0x6aa   : > { %v4902_v36 = vpop.f32.mrf.mxu1 }
 0x6ac   : > { %v4909_v22 = vpop.f32.mrf.mxu1 }
 0x6ae   : > { %v4914_v2 = vpop.f32.mrf.mxu1 }
 0x6b0   : > { %v4919_v33 = vpop.f32.mrf.mxu1 }
 0x6b2   : > { %v4925_v26 = vpop.f32.mrf.mxu1 }
 0x726   : > { %v3683_v61 = vpop.f32.mrf.mxu0 }
 0x727   : > { %v2822_v25 = vadd.f32 %v3683_v61, %v3647_v44  ;;  %v2672_v44 = vpop.f32.mrf.mxu1 }
 0x728   : > { %v2813_v42 = vpop.f32.mrf.mxu0 }
 0x729   : > { %v2949_v62 = vadd.f32 %v4897_v18, %v2822_v25  ;;  %v2814_v5 = vadd.f32 %v2813_v42, %v2592_v54 }
 0x72a   : > { %v3684_v46 = vpop.f32.mrf.mxu0 }
 0x72b   : > { %v2981_v45 = vmax.f32 %v2949_v62, 0.0  ;;  %v2947_v51 = vadd.f32 %v4897_v18, %v2814_v5  ;;  %v2825_v24 = vadd.f32 %v3684_v46, %v3648_v35 }
 0x72c   : > { %v2816_v57 = vpop.f32.mrf.mxu0 }
 0x72d   : > { %3013 = vst [vmem:[%s4905_s23 + $0x10] sm:$0xff] %v2981_v45  ;;  %v2979_v39 = vmax.f32 %v2947_v51, 0.0  ;;  %v2950_v19 = vadd.f32 %v4897_v18, %v2825_v24  ;;  %v2817_v52 = vadd.f32 %v2816_v57, %v2595_v53 }
 0x72f   : > { %3011 = vst [vmem:[%s4905_s23] sm:$0xff] %v2979_v39  ;;  %v2982_v59 = vmax.f32 %v2950_v19, 0.0  ;;  %v2948_v13 = vadd.f32 %v4897_v18, %v2817_v52  ;;  %v3687_v28 = vpop.f32.mrf.mxu0 }
 0x730   : > { %v2838_v8 = vadd.f32 %v3687_v28, %v3651_v4 }
 0x731   : > { %3014 = vst [vmem:[%s4905_s23 + $0x18] sm:$0xff] %v2982_v59  ;;  %v2980_v48 = vmax.f32 %v2948_v13, 0.0  ;;  %v2829_v43 = vpop.f32.mrf.mxu0 }
 0x732   : > { %v2953_v9 = vadd.f32 %v4897_v18, %v2838_v8  ;;  %v2830_v20 = vadd.f32 %v2829_v43, %v2608_v50 }
 0x733   : > { %3012 = vst [vmem:[%s4905_s23 + $0x8] sm:$0xff] %v2980_v48  ;;  %v3688_v21 = vpop.f32.mrf.mxu0 }
 0x734   : > { %v2985_v55 = vmax.f32 %v2953_v9, 0.0  ;;  %v2951_v1 = vadd.f32 %v4897_v18, %v2830_v20  ;;  %v2841_v16 = vadd.f32 %v3688_v21, %v3652_v40 }
 0x735   : > { %v2832_v7 = vpop.f32.mrf.mxu0 }
 0x736   : > { %3017 = vst [vmem:[%s4905_s23 + $0x30] sm:$0xff] %v2985_v55  ;;  %v2983_v15 = vmax.f32 %v2951_v1, 0.0  ;;  %v2954_v10 = vadd.f32 %v4897_v18, %v2841_v16  ;;  %v2833_v63 = vadd.f32 %v2832_v7, %v2611_v17 }
 0x737   : > { %v3691_v31 = vpop.f32.mrf.mxu0 }
 0x738   : > { %3015 = vst [vmem:[%s4905_s23 + $0x20] sm:$0xff] %v2983_v15  ;;  %v2986_v30 = vmax.f32 %v2954_v10, 0.0  ;;  %v2952_v47 = vadd.f32 %v4897_v18, %v2833_v63  ;;  %v2854_v34 = vadd.f32 %v3691_v31, %v3655_v14 }
 0x739   : > { %v2845_v41 = vpop.f32.mrf.mxu0 }
 0x73a   : > { %3018 = vst [vmem:[%s4905_s23 + $0x38] sm:$0xff] %v2986_v30  ;;  %v2984_v60 = vmax.f32 %v2952_v47, 0.0  ;;  %v2957_v38 = vadd.f32 %v4897_v18, %v2854_v34  ;;  %v2846_v27 = vadd.f32 %v2845_v41, %v2624_v49  ;;  %v3668_v49 = vpop.f32.mrf.mxu1 }
 0x73b   : > { %v3692_v11 = vpop.f32.mrf.mxu0 }
 0x73c   : > { %3016 = vst [vmem:[%s4905_s23 + $0x28] sm:$0xff] %v2984_v60  ;;  %v2989_v23 = vmax.f32 %v2957_v38, 0.0  ;;  %v2955_v0 = vadd.f32 %v4897_v18, %v2846_v27  ;;  %v2857_v37 = vadd.f32 %v3692_v11, %v4881_v56  ;;  %v2675_v45 = vpop.f32.mrf.mxu1 }
 0x73d   : > { %v2848_v29 = vpop.f32.mrf.mxu0 }
 0x73e   : > { %3021 = vst [vmem:[%s4905_s23 + $0x50] sm:$0xff] %v2989_v23  ;;  %v2987_v54 = vmax.f32 %v2955_v0, 0.0  ;;  %v2958_v35 = vadd.f32 %v4897_v18, %v2857_v37  ;;  %v2849_v53 = vadd.f32 %v2848_v29, %v4883_v32  ;;  %v3671_v59 = vpop.f32.mrf.mxu1 }
 0x73f   : > { %v3695_v4 = vpop.f32.mrf.mxu0 }
 0x740   : > { %3019 = vst [vmem:[%s4905_s23 + $0x40] sm:$0xff] %v2987_v54  ;;  %v2990_v50 = vmax.f32 %v2958_v35, 0.0  ;;  %v2956_v40 = vadd.f32 %v4897_v18, %v2849_v53  ;;  %v2870_v17 = vadd.f32 %v3695_v4, %v4885_v3  ;;  %v2688_v20 = vpop.f32.mrf.mxu1 }
 0x741   : > { %v2861_v14 = vpop.f32.mrf.mxu0 }
 0x742   : > { %3022 = vst [vmem:[%s4905_s23 + $0x58] sm:$0xff] %v2990_v50  ;;  %v2988_v56 = vmax.f32 %v2956_v40, 0.0  ;;  %v2961_v61 = vadd.f32 %v4897_v18, %v2870_v17  ;;  %v2862_v25 = vadd.f32 %v2861_v14, %v4887_v6  ;;  %v3672_v10 = vpop.f32.mrf.mxu1 }
 0x743   : > { %v3696_v42 = vpop.f32.mrf.mxu0 }
 0x744   : > { %3020 = vst [vmem:[%s4905_s23 + $0x48] sm:$0xff] %v2988_v56  ;;  %v2993_v32 = vmax.f32 %v2961_v61, 0.0  ;;  %v2959_v62 = vadd.f32 %v4897_v18, %v2862_v25  ;;  %v2873_v5 = vadd.f32 %v3696_v42, %v4889_v58  ;;  %v2691_v60 = vpop.f32.mrf.mxu1 }
 0x745   : > { %v2864_v46 = vpop.f32.mrf.mxu0 }
 0x746   : > { %3025 = vst [vmem:[%s4905_s23 + $0x70] sm:$0xff] %v2993_v32  ;;  %v2991_v3 = vmax.f32 %v2959_v62, 0.0  ;;  %v2962_v51 = vadd.f32 %v4897_v18, %v2873_v5  ;;  %v2865_v24 = vadd.f32 %v2864_v46, %v4892_v12 }
 0x747   : > { %v3699_v57 = vpop.f32.mrf.mxu0 }
 0x748   : > { %3023 = vst [vmem:[%s4905_s23 + $0x60] sm:$0xff] %v2991_v3  ;;  %v2994_v6 = vmax.f32 %v2962_v51, 0.0  ;;  %v2960_v39 = vadd.f32 %v4897_v18, %v2865_v24  ;;  %v2886_v19 = vadd.f32 %v3699_v57, %v4902_v36 }
 0x749   : > { %v2877_v52 = vpop.f32.mrf.mxu0 }
 0x74a   : > { %3026 = vst [vmem:[%s4905_s23 + $0x78] sm:$0xff] %v2994_v6  ;;  %v2992_v58 = vmax.f32 %v2960_v39, 0.0  ;;  %v2965_v13 = vadd.f32 %v4897_v18, %v2886_v19  ;;  %v2878_v28 = vadd.f32 %v2877_v52, %v4909_v22 }
 0x74b   : > { %v3700_v8 = vpop.f32.mrf.mxu0 }
 0x74c   : > { %3024 = vst [vmem:[%s4905_s23 + $0x68] sm:$0xff] %v2992_v58  ;;  %v2997_v12 = vmax.f32 %v2965_v13, 0.0  ;;  %v2963_v48 = vadd.f32 %v4897_v18, %v2878_v28  ;;  %v2889_v43 = vadd.f32 %v3700_v8, %v4914_v2 }
 0x74d   : > { %v2880_v9 = vpop.f32.mrf.mxu0 }
 0x74e   : > { %3029 = vst [vmem:[%s4905_s23 + $0x90] sm:$0xff] %v2997_v12  ;;  %v2995_v36 = vmax.f32 %v2963_v48, 0.0  ;;  %v2966_v21 = vadd.f32 %v4897_v18, %v2889_v43  ;;  %v2881_v55 = vadd.f32 %v2880_v9, %v4919_v33 }
 0x74f   : > { %v3703_v1 = vpop.f32.mrf.mxu0 }
 0x750   : > { %3027 = vst [vmem:[%s4905_s23 + $0x80] sm:$0xff] %v2995_v36  ;;  %v2998_v22 = vmax.f32 %v2966_v21, 0.0  ;;  %v2964_v16 = vadd.f32 %v4897_v18, %v2881_v55  ;;  %v2902_v7 = vadd.f32 %v3703_v1, %v4925_v26 }
 0x751   : > { %v2893_v15 = vpop.f32.mrf.mxu0 }
 0x752   : > { %3030 = vst [vmem:[%s4905_s23 + $0x98] sm:$0xff] %v2998_v22  ;;  %v2996_v2 = vmax.f32 %v2964_v16, 0.0  ;;  %v2969_v63 = vadd.f32 %v4897_v18, %v2902_v7  ;;  %v2894_v31 = vadd.f32 %v2893_v15, %v2672_v44  ;;  %v3675_v44 = vpop.f32.mrf.mxu1 }
 0x753   : > { %v3704_v30 = vpop.f32.mrf.mxu0 }
 0x754   : > { %3028 = vst [vmem:[%s4905_s23 + $0x88] sm:$0xff] %v2996_v2  ;;  %v3001_v47 = vmax.f32 %v2969_v63, 0.0  ;;  %v2967_v33 = vadd.f32 %v4897_v18, %v2894_v31  ;;  %v2905_v34 = vadd.f32 %v3704_v30, %v3668_v49  ;;  %v2704_v14 = vpop.f32.mrf.mxu1 }
 0x755   : > { %v2896_v41 = vpop.f32.mrf.mxu0 }
 0x756   : > { %3033 = vst [vmem:[%s4905_s23 + $0xb0] sm:$0xff] %v3001_v47  ;;  %v2999_v26 = vmax.f32 %v2967_v33, 0.0  ;;  %v2970_v38 = vadd.f32 %v4897_v18, %v2905_v34  ;;  %v2897_v27 = vadd.f32 %v2896_v41, %v2675_v45  ;;  %v3676_v46 = vpop.f32.mrf.mxu1 }
 0x757   : > { %v3707_v11 = vpop.f32.mrf.mxu0 }
 0x758   : > { %3031 = vst [vmem:[%s4905_s23 + $0xa0] sm:$0xff] %v2999_v26  ;;  %v3002_v23 = vmax.f32 %v2970_v38, 0.0  ;;  %v2968_v0 = vadd.f32 %v4897_v18, %v2897_v27  ;;  %v2918_v37 = vadd.f32 %v3707_v11, %v3671_v59  ;;  %v2707_v52 = vpop.f32.mrf.mxu1 }
 0x759   : > { %v2909_v29 = vpop.f32.mrf.mxu0 }
 0x75a   : > { %3034 = vst [vmem:[%s4905_s23 + $0xb8] sm:$0xff] %v3002_v23  ;;  %v3000_v54 = vmax.f32 %v2968_v0, 0.0  ;;  %v2973_v35 = vadd.f32 %v4897_v18, %v2918_v37  ;;  %v2910_v53 = vadd.f32 %v2909_v29, %v2688_v20 }
 0x75b   : > { %v3708_v4 = vpop.f32.mrf.mxu0 }
 0x75c   : > { %3032 = vst [vmem:[%s4905_s23 + $0xa8] sm:$0xff] %v3000_v54  ;;  %v3005_v50 = vmax.f32 %v2973_v35, 0.0  ;;  %v2971_v40 = vadd.f32 %v4897_v18, %v2910_v53  ;;  %v2921_v17 = vadd.f32 %v3708_v4, %v3672_v10 }
 0x75d   : > { %v2912_v49 = vpop.f32.mrf.mxu0 }
 0x75e   : > { %3037 = vst [vmem:[%s4905_s23 + $0xd0] sm:$0xff] %v3005_v50  ;;  %v3003_v56 = vmax.f32 %v2971_v40, 0.0  ;;  %v2974_v61 = vadd.f32 %v4897_v18, %v2921_v17  ;;  %v2913_v25 = vadd.f32 %v2912_v49, %v2691_v60 }
 0x75f   : > { %v3711_v42 = vpop.f32.mrf.mxu0 }
 0x760   : > { %3035 = vst [vmem:[%s4905_s23 + $0xc0] sm:$0xff] %v3003_v56  ;;  %v3006_v32 = vmax.f32 %v2974_v61, 0.0  ;;  %v2972_v62 = vadd.f32 %v4897_v18, %v2913_v25  ;;  %v2934_v5 = vadd.f32 %v3711_v42, %v3675_v44 }
 0x761   : > { %v2925_v45 = vpop.f32.mrf.mxu0 }
 0x762   : > { %3038 = vst [vmem:[%s4905_s23 + $0xd8] sm:$0xff] %v3006_v32  ;;  %v3004_v3 = vmax.f32 %v2972_v62, 0.0  ;;  %v2977_v51 = vadd.f32 %v4897_v18, %v2934_v5  ;;  %v2926_v24 = vadd.f32 %v2925_v45, %v2704_v14 }
 0x763   : > { %v3712_v57 = vpop.f32.mrf.mxu0 }
 0x764   : > { %3036 = vst [vmem:[%s4905_s23 + $0xc8] sm:$0xff] %v3004_v3  ;;  %v3009_v6 = vmax.f32 %v2977_v51, 0.0  ;;  %v2975_v39 = vadd.f32 %v4897_v18, %v2926_v24  ;;  %v2937_v19 = vadd.f32 %v3712_v57, %v3676_v46 }
 0x765   : > { %v2928_v59 = vpop.f32.mrf.mxu0 }
 0x766   : > { %3041 = vst [vmem:[%s4905_s23 + $0xf0] sm:$0xff] %v3009_v6  ;;  %v3007_v58 = vmax.f32 %v2975_v39, 0.0  ;;  %v2978_v13 = vadd.f32 %v4897_v18, %v2937_v19  ;;  %v2929_v28 = vadd.f32 %v2928_v59, %v2707_v52 }
 0x768   : > { %3039 = vst [vmem:[%s4905_s23 + $0xe0] sm:$0xff] %v3007_v58  ;;  %v3010_v8 = vmax.f32 %v2978_v13, 0.0  ;;  %v2976_v12 = vadd.f32 %v4897_v18, %v2929_v28 }
 0x76a   : > { %3042 = vst [vmem:[%s4905_s23 + $0xf8] sm:$0xff] %v3010_v8  ;;  %v3008_v48 = vmax.f32 %v2976_v12, 0.0 }
 0x76c   : > { %3040 = vst [vmem:[%s4905_s23 + $0xe8] sm:$0xff] %v3008_v48 }
 0x76d   : > { %3964 = shalt.err (!%p3961_p5)
}
 0x76e   : > { %s3965_s28 = scalar_lea.hbm %s4991_s26, 4096  ;;  %s3969_s18 = scalar_lea.hbm %s5061_s17, 8192 }
 0x76f   : > { %p3966_p6 = scmp.ne.s32.totalorder %s4991_s26, %s3965_s28  ;;  %p3970_p10 = scmp.lt.s32.totalorder %s4991_s26, %s5061_s17 }
 0x770   : > { %p3971_p11 = scmp.lt.s32.totalorder %s3969_s18, %s3965_s28 }
 0x771   : > { %p3967_p7 = pnand %p3966_p6, %p4164_p4 }
 0x772   : > { %p3972_p12 = por %p3971_p11, %p3970_p10 }
 0x773   : > { %p3968_p9 = pneg %p3967_p7 }
 0x775   : > { %p3973_p13 = pnand %p3972_p12, %p3968_p9 }
 0x777   : > { %3976 = shalt.err (!%p3973_p13)
}
 0x778   : > { %s4032_s22 = smov 128   ;;  %s4033_s19 = smov 8  }
 0x779   : > { %3719 = dma.vmem_to_hbm [thread:$0]  (%p4164_p4), %s4993_s2, 4096, %s4991_s26, %s4999_s27, %s4032_s22, %s4032_s22, %s4033_s19  }
 0x77a PF: > { %p3725_p0 = scmp.ge.s32.totalorder %s4027_s29, 2  ;;  %s3074_s20 = sand.u32 1, %s4007_s24  }
 0x77b   : > { %s3075_s3 = scalar_lea.sflag [#allocation3], %s3074_s20 }
 0x77c   : > { %p3722_p1 = pnand %p3725_p0, %p4171_p8 }
 0x77e   : > { %p3723_p2 = pneg %p3722_p1 }
 0x780   : > { %4002 = dma.done.wait (%p3723_p2), %s3075_s3, 4096  }
 0x781   : > { %4004 = vsyncadd (%p3723_p2), %s3075_s3, 4294963200  ;;  %s30_s29 = sadd.s32 1, %s4027_s29   ;;  %s5079_s28 = sld [smem:[#allocation5_spill]] }
 0x782   : > { %p27_p3 = scmp.ge.s32.totalorder %s30_s29, 4   ;;  %s5080_s26 = sld [smem:[#allocation8_spill]] }
 0x783   : > { %s5081_s27 = sld [smem:[#allocation6_spill]]  ;;  %s5083_s24 = smov %s4011_s25 }
 0x784   : > { %s5082_s1 = sld [smem:[#allocation7_spill]] }
 0x786   :  { %29 = sbr.rel (!%p27_p3) target bundleno = 9 (0x9), region = 126 }
 0x787   : > { %s5084_s25 = smov %s5079_s28 }
 0x78a   : > { %s5085_s28 = smov %s5082_s1 }
 0x78b   :  { %3080 = vsyncpa [#allocation3], 1 }
 0x78c   :  { %3082 = vsyncpa [#allocation3 + $0x1], 1 }

</bundles_post_ra>
